<compile_context>
chip_gen: v6e
topology: v6e:2x2x1
jax: 0.10.0
libtpu: 0.0.40
codegen_flags: <defaults>
</compile_context>

<pallas_src>
import functools

import jax
import jax.numpy as jnp
from jax.experimental import pallas as pl
from jax.experimental.pallas import tpu as pltpu


# ---------------------------------------------------------------------------
# Kernel
# ---------------------------------------------------------------------------
def _make_adaattn_kernel(tk, ns_valid):
    """Online-softmax AdaAttN attention kernel.

    Per grid point (b, qi, ki):
      f_ref    : (1, TQ, Ckp)  projected content key tile (query), bf16
      g_ref    : (1, TK, Ckp)  projected style key tile   (key),   bf16
      hs_ref   : (1, TK, Cp)   projected style tile       (value), bf16
      norm_ref : (1, TQ, Cp)   mean-variance-normalized content tile, bf16
      o_ref    : (1, TQ, Cp)   output tile
    Scratch (persist across the ki reduction axis, all f32):
      m_sc (TQ,1) running max, l_sc (TQ,1) running denom,
      acc_mean_sc (TQ,Cp) running sum(p*Hs), acc_sq_sc (TQ,Cp) running sum(p*Hs^2).
    """
    needs_mask = (ns_valid % tk) != 0

    def kernel(f_ref, g_ref, hs_ref, norm_ref, o_ref,
               m_sc, l_sc, acc_mean_sc, acc_sq_sc):
        ki = pl.program_id(2)

        @pl.when(ki == 0)
        def _():
            m_sc[...] = jnp.full_like(m_sc, -jnp.inf)
            l_sc[...] = jnp.zeros_like(l_sc)
            acc_mean_sc[...] = jnp.zeros_like(acc_mean_sc)
            acc_sq_sc[...] = jnp.zeros_like(acc_sq_sc)

        f = f_ref[0]                       # (TQ, Ckp), bf16 -> MXU at peak rate
        g = g_ref[0]                       # (TK, Ckp), bf16

        # S_tile = F @ G^T  (NT matmul, no explicit transpose materialized).
        s = jax.lax.dot_general(
            f, g, (((1,), (1,)), ((), ())),
            preferred_element_type=jnp.float32)            # (TQ, TK) f32

        if needs_mask:
            # Padded style columns exist only in the LAST ki tile; mask only there.
            last = pl.num_programs(2) - 1

            def _mask(sv):
                col = ki * tk + jax.lax.broadcasted_iota(jnp.int32, sv.shape, 1)
                return jnp.where(col < ns_valid, sv, -1e30)

            s = jax.lax.cond(ki == last, _mask, lambda sv: sv, s)

        # Online softmax update (f32 state).
        m_prev = m_sc[...]
        m_new = jnp.maximum(m_prev, jnp.max(s, axis=-1, keepdims=True))
        alpha = jnp.exp(m_prev - m_new)
        p = jnp.exp(s - m_new)                             # (TQ, TK) f32

        hs = hs_ref[0]                                     # (TK, Cp), bf16
        p_lo = p.astype(hs.dtype)                          # bf16 for the MXU feed
        hs_sq = hs * hs                                    # VPU, no VMEM temporary

        l_sc[...] = alpha * l_sc[...] + jnp.sum(p, axis=-1, keepdims=True)
        acc_mean_sc[...] = alpha * acc_mean_sc[...] + jnp.dot(
            p_lo, hs, preferred_element_type=jnp.float32)
        acc_sq_sc[...] = alpha * acc_sq_sc[...] + jnp.dot(
            p_lo, hs_sq, preferred_element_type=jnp.float32)
        m_sc[...] = m_new

        @pl.when(ki == pl.num_programs(2) - 1)
        def _():
            # Fold 1/l into the final normalization (single EUP reciprocal).
            inv_l = pl.reciprocal(l_sc[...], approx=True)
            mean = acc_mean_sc[...] * inv_l                # (TQ, Cp) f32
            sq = acc_sq_sc[...] * inv_l
            std = jnp.sqrt(jnp.maximum(sq - mean * mean, 0.0))
            norm = norm_ref[0].astype(jnp.float32)
            o_ref[0] = (std * norm + mean).astype(o_ref.dtype)

    return kernel


# ---------------------------------------------------------------------------
# Wrapper
# ---------------------------------------------------------------------------
def _round_up(n, m):
    return ((n + m - 1) // m) * m


def _flatten_nchw(x):
    # (B, C, H, W) -> (B, H*W, C), spatial flattened row-major (y*W + x).
    b, c, h, w = x.shape
    return jnp.transpose(x.reshape(b, c, h * w), (0, 2, 1))


def _pad_to(x, rows, cols):
    b, r, c = x.shape
    return jnp.pad(x, ((0, 0), (0, rows - r), (0, cols - c)))


@functools.partial(jax.jit,
                   static_argnames=("tq", "tk", "compute_dtype", "interpret"))
def adaattn_forward(content, style, content_key, style_key, params,
                    *, tq=1024, tk=512, compute_dtype=jnp.bfloat16,
                    interpret=False):
    """content/style: (B, C, H, W) / (B, C, Hs, Ws); keys: (B, Ck, ., .)."""
    b, c, h, w = content.shape
    _, ck_dim, hs_sp, ws_sp = style_key.shape
    nc = h * w
    ns = hs_sp * ws_sp

    wf, bf = params["wf"], params["bf"]
    wg, bg = params["wg"], params["bg"]
    wh, bh = params["wh"], params["bh"]

    ck_flat = _flatten_nchw(content_key)    # (B, Nc, Ck)
    sk_flat = _flatten_nchw(style_key)      # (B, Ns, Ck)
    sty_flat = _flatten_nchw(style)         # (B, Ns, C)
    con_flat = _flatten_nchw(content)       # (B, Nc, C)

    # TODO(synk): the max_sample random-subsampling branch (torch.randperm) is not
    # implemented; this covers the Ns <= max_sample path of the PyTorch forward.

    # 1x1 convs hoisted to XLA (tiny K=N=Ck matmuls; weights consumed
    # pre-transposed).  Results cast to bf16 so the kernel feeds the MXU at peak
    # rate and the g/hs DMA bytes per ki step are halved.
    f_proj = (jnp.einsum("bnk,ok->bno", ck_flat, wf) + bf[0]).astype(compute_dtype)
    g_proj = (jnp.einsum("bnk,ok->bno", sk_flat, wg) + bg[0]).astype(compute_dtype)
    h_proj = (jnp.einsum("bnc,oc->bno", sty_flat, wh) + bh[0]).astype(compute_dtype)

    # mean_variance_norm(content): full-spatial reduction, hoisted out of the
    # tiled kernel (plain XLA, rsqrt on EUP).
    cmean = jnp.mean(con_flat, axis=1, keepdims=True)
    cvar = jnp.var(con_flat, axis=1, keepdims=True, ddof=1) + 1e-5
    norm = ((con_flat - cmean) * jax.lax.rsqrt(cvar)).astype(compute_dtype)

    # Lane-dense padding of channel dims; spatial padding up to the tile sizes.
    ckp = _round_up(ck_dim, 128)
    cp = _round_up(c, 128)
    tq_ = min(tq, _round_up(nc, 128))
    tk_ = min(tk, _round_up(ns, 128))
    ncp = _round_up(nc, tq_)
    nsp = _round_up(ns, tk_)

    f_p = _pad_to(f_proj, ncp, ckp)
    g_p = _pad_to(g_proj, nsp, ckp)
    h_p = _pad_to(h_proj, nsp, cp)
    n_p = _pad_to(norm, ncp, cp)

    kernel = _make_adaattn_kernel(tk_, ns)
    grid = (b, ncp // tq_, nsp // tk_)

    out_p = pl.pallas_call(
        kernel,
        out_shape=jax.ShapeDtypeStruct((b, ncp, cp), content.dtype),
        grid_spec=pltpu.PrefetchScalarGridSpec(
            num_scalar_prefetch=0,
            grid=grid,
            in_specs=[
                pl.BlockSpec((1, tq_, ckp), lambda bi, qi, ki: (bi, qi, 0)),
                pl.BlockSpec((1, tk_, ckp), lambda bi, qi, ki: (bi, ki, 0)),
                pl.BlockSpec((1, tk_, cp), lambda bi, qi, ki: (bi, ki, 0)),
                pl.BlockSpec((1, tq_, cp), lambda bi, qi, ki: (bi, qi, 0)),
            ],
            out_specs=pl.BlockSpec((1, tq_, cp), lambda bi, qi, ki: (bi, qi, 0)),
            scratch_shapes=[
                pltpu.VMEM((tq_, 1), jnp.float32),    # running max
                pltpu.VMEM((tq_, 1), jnp.float32),    # running denom
                pltpu.VMEM((tq_, cp), jnp.float32),   # running sum(p * Hs)
                pltpu.VMEM((tq_, cp), jnp.float32),   # running sum(p * Hs^2)
            ],
        ),
        compiler_params=pltpu.CompilerParams(
            dimension_semantics=("parallel", "parallel", "arbitrary"),
            vmem_limit_bytes=48 * 1024 * 1024,
        ),
        interpret=interpret,
    )(f_p, g_p, h_p, n_p)

    out = out_p[:, :nc, :c]                                 # drop padding
    return jnp.transpose(out, (0, 2, 1)).reshape(b, c, h, w)


# ---------------------------------------------------------------------------
# Pure-JAX reference (mirrors the PyTorch forward, no sampling branch)
# ---------------------------------------------------------------------------
def adaattn_reference(content, style, content_key, style_key, params):
    b, c, h, w = content.shape
    wf, bf, wg, bg, wh, bh = (params["wf"], params["bf"], params["wg"],
                              params["bg"], params["wh"], params["bh"])
    conv1x1 = lambda x, W, B: jnp.einsum("oc,bcyx->boyx", W, x) + B[0][None, :, None, None]
    F = conv1x1(content_key, wf, bf)
    G = conv1x1(style_key, wg, bg)
    Hh = conv1x1(style, wh, bh)
    Gf = G.reshape(b, G.shape[1], -1)                                 # (B, Ck, Ns)
    style_flat = jnp.transpose(Hh.reshape(b, c, -1), (0, 2, 1))       # (B, Ns, C)
    Ff = jnp.transpose(F.reshape(b, F.shape[1], -1), (0, 2, 1))       # (B, Nc, Ck)
    S = jax.nn.softmax(jnp.einsum("bnk,bks->bns", Ff, Gf), axis=-1)
    mean = jnp.einsum("bns,bsc->bnc", S, style_flat)
    std = jnp.sqrt(jnp.maximum(
        jnp.einsum("bns,bsc->bnc", S, style_flat ** 2) - mean ** 2, 0.0))
    mean = jnp.transpose(mean, (0, 2, 1)).reshape(b, c, h, w)
    std = jnp.transpose(std, (0, 2, 1)).reshape(b, c, h, w)
    cflat = content.reshape(b, c, -1)
    cmean = cflat.mean(-1)[:, :, None, None]
    cvar = cflat.var(-1, ddof=1)[:, :, None, None] + 1e-5
    norm = (content - cmean) / jnp.sqrt(cvar)
    return std * norm + mean


if __name__ == "__main__":
    key = jax.random.PRNGKey(0)
    B, C, CK = 2, 4, 4          # in_planes=4, key_planes=4

    kp = jax.random.split(key, 6)
    # Deterministic parameters (shapes as in nn.Conv2d(k,k,1) / nn.Conv2d(c,c,1)).
    params = {
        "wf": 0.2 * jax.random.normal(kp[0], (CK, CK), jnp.float32),
        "bf": 0.1 * jax.random.normal(kp[1], (1, CK), jnp.float32),
        "wg": 0.2 * jax.random.normal(kp[2], (CK, CK), jnp.float32),
        "bg": 0.1 * jax.random.normal(kp[3], (1, CK), jnp.float32),
        "wh": 0.2 * jax.random.normal(kp[4], (C, C), jnp.float32),
        "bh": 0.1 * jax.random.normal(kp[5], (1, C), jnp.float32),
    }

    def run_case(H, W, HS, WS, tq, tk):
        kc = jax.random.split(jax.random.fold_in(key, H * 1000 + HS), 4)
        content = jax.random.normal(kc[0], (B, C, H, W), jnp.float32)
        style = jax.random.normal(kc[1], (B, C, HS, WS), jnp.float32)
        content_key = jax.random.normal(kc[2], (B, CK, H, W), jnp.float32)
        style_key = jax.random.normal(kc[3], (B, CK, HS, WS), jnp.float32)

        out = adaattn_forward(content, style, content_key, style_key, params,
                              tq=tq, tk=tk)
        out = jax.block_until_ready(out)

        ref = adaattn_reference(content, style, content_key, style_key, params)
        assert out.shape == ref.shape
        err = float(jnp.max(jnp.abs(out.astype(jnp.float32) - ref)))
        # bf16 MXU feed -> bf16-level tolerance against the f32 reference.
        assert jnp.allclose(out.astype(jnp.float32), ref, atol=4e-2, rtol=4e-2), err

    # Case 1: online softmax across 2 ki tiles, no padding mask (grid = (2,2,2)).
    run_case(16, 16, 16, 16, tq=128, tk=128)
    # Case 2: ragged sizes -- Ns=144 exercises the last-tile padding mask
    # (lax.cond path), and Nc=81 exercises padded query rows.
    run_case(9, 9, 12, 12, tq=128, tk=128)

    print("KERNEL_OK")
</pallas_src>

<mosaic_0001>
module attributes {stable_mosaic.version = 11 : i64} {
  func.func @kernel(%arg0: i32, %arg1: i32, %arg2: i32, %arg3: memref<1x128x128xbf16, #tpu.memory_space<vmem>>, %arg4: memref<1x128x128xbf16, #tpu.memory_space<vmem>>, %arg5: memref<1x128x128xbf16, #tpu.memory_space<vmem>>, %arg6: memref<1x128x128xbf16, #tpu.memory_space<vmem>>, %arg7: memref<1x128x128xf32, #tpu.memory_space<vmem>>, %arg8: memref<128x1xf32, #tpu.memory_space<vmem>>, %arg9: memref<128x1xf32, #tpu.memory_space<vmem>>, %arg10: memref<128x128xf32, #tpu.memory_space<vmem>>, %arg11: memref<128x128xf32, #tpu.memory_space<vmem>>) attributes {dimension_semantics = [#tpu.dimension_semantics<parallel>, #tpu.dimension_semantics<parallel>, #tpu.dimension_semantics<arbitrary>], iteration_bounds = array<i64: 2, 2, 2>, scalar_prefetch = 0 : i64, scratch_operands = 4 : i64, tpu.core_type = #tpu.core_type<tc>, window_params = [{transform_indices = @transform_0, window_bounds = array<i64: 1, 128, 128>}, {transform_indices = @transform_1, window_bounds = array<i64: 1, 128, 128>}, {transform_indices = @transform_2, window_bounds = array<i64: 1, 128, 128>}, {transform_indices = @transform_3, window_bounds = array<i64: 1, 128, 128>}, {transform_indices = @transform_4, window_bounds = array<i64: 1, 128, 128>}]} {
    %c0_i32 = arith.constant 0 : i32
    %0 = arith.cmpi eq, %arg2, %c0_i32 : i32
    %1 = arith.extui %0 : i1 to i32
    %c0_i32_0 = arith.constant 0 : i32
    %2 = arith.cmpi ne, %1, %c0_i32_0 : i32
    scf.if %2 {
      %cst_30 = arith.constant 0xFF800000 : f32
      %43 = vector.broadcast %cst_30 : f32 to vector<128x1xf32>
      %c0_31 = arith.constant 0 : index
      %c0_32 = arith.constant 0 : index
      %44 = vector.load %arg8[%c0_31, %c0_32] : memref<128x1xf32, #tpu.memory_space<vmem>>, vector<128x1xf32>
      tpu.vector_store %arg8[%c0_31, %c0_32], %43 {strides = array<i32>} : memref<128x1xf32, #tpu.memory_space<vmem>>, vector<128x1xf32>,
      %cst_33 = arith.constant 0.000000e+00 : f32
      %45 = vector.broadcast %cst_33 : f32 to vector<128x1xf32>
      %c0_34 = arith.constant 0 : index
      %c0_35 = arith.constant 0 : index
      %46 = vector.load %arg9[%c0_34, %c0_35] : memref<128x1xf32, #tpu.memory_space<vmem>>, vector<128x1xf32>
      tpu.vector_store %arg9[%c0_34, %c0_35], %45 {strides = array<i32>} : memref<128x1xf32, #tpu.memory_space<vmem>>, vector<128x1xf32>,
      %cst_36 = arith.constant 0.000000e+00 : f32
      %47 = vector.broadcast %cst_36 : f32 to vector<128x128xf32>
      %c0_37 = arith.constant 0 : index
      %c0_38 = arith.constant 0 : index
      %48 = vector.load %arg10[%c0_37, %c0_38] : memref<128x128xf32, #tpu.memory_space<vmem>>, vector<128x128xf32>
      tpu.vector_store %arg10[%c0_37, %c0_38], %47 {strides = array<i32>} : memref<128x128xf32, #tpu.memory_space<vmem>>, vector<128x128xf32>,
      %cst_39 = arith.constant 0.000000e+00 : f32
      %49 = vector.broadcast %cst_39 : f32 to vector<128x128xf32>
      %c0_40 = arith.constant 0 : index
      %c0_41 = arith.constant 0 : index
      %50 = vector.load %arg11[%c0_40, %c0_41] : memref<128x128xf32, #tpu.memory_space<vmem>>, vector<128x128xf32>
      tpu.vector_store %arg11[%c0_40, %c0_41], %49 {strides = array<i32>} : memref<128x128xf32, #tpu.memory_space<vmem>>, vector<128x128xf32>,
    } else {
    }
    %c0 = arith.constant 0 : index
    %c0_1 = arith.constant 0 : index
    %c0_2 = arith.constant 0 : index
    %3 = vector.load %arg3[%c0, %c0_1, %c0_2] : memref<1x128x128xbf16, #tpu.memory_space<vmem>>, vector<1x128x128xbf16>
    %4 = vector.shape_cast %3 : vector<1x128x128xbf16> to vector<128x128xbf16>
    %c0_3 = arith.constant 0 : index
    %c0_4 = arith.constant 0 : index
    %c0_5 = arith.constant 0 : index
    %5 = vector.load %arg4[%c0_3, %c0_4, %c0_5] : memref<1x128x128xbf16, #tpu.memory_space<vmem>>, vector<1x128x128xbf16>
    %6 = vector.shape_cast %5 : vector<1x128x128xbf16> to vector<128x128xbf16>
    %cst = arith.constant dense<0.000000e+00> : vector<128x128xf32>
    %7 = tpu.matmul %4, %6, %cst {dimension_numbers = #tpu.dot_dimension_numbers<[1], [1], [0], [0], [0, 0, 1, 0], [], []>} : vector<128x128xbf16>, vector<128x128xbf16>, vector<128x128xf32> -> vector<128x128xf32>
    %c0_6 = arith.constant 0 : index
    %c0_7 = arith.constant 0 : index
    %8 = vector.load %arg8[%c0_6, %c0_7] : memref<128x1xf32, #tpu.memory_space<vmem>>, vector<128x1xf32>
    %cst_8 = arith.constant dense<0xFF800000> : vector<128xf32>
    %9 = vector.multi_reduction <maximumf>, %7, %cst_8 [1] : vector<128x128xf32> to vector<128xf32>
    %10 = vector.shape_cast %9 : vector<128xf32> to vector<128x1xf32>
    %11 = arith.maximumf %8, %10 : vector<128x1xf32>
    %12 = arith.subf %8, %11 : vector<128x1xf32>
    %13 = math.exp %12 : vector<128x1xf32>
    %14 = vector.broadcast %11 : vector<128x1xf32> to vector<128x128xf32>
    %15 = arith.subf %7, %14 : vector<128x128xf32>
    %16 = math.exp %15 : vector<128x128xf32>
    %c0_9 = arith.constant 0 : index
    %c0_10 = arith.constant 0 : index
    %c0_11 = arith.constant 0 : index
    %17 = vector.load %arg5[%c0_9, %c0_10, %c0_11] : memref<1x128x128xbf16, #tpu.memory_space<vmem>>, vector<1x128x128xbf16>
    %18 = vector.shape_cast %17 : vector<1x128x128xbf16> to vector<128x128xbf16>
    %19 = arith.truncf %16 : vector<128x128xf32> to vector<128x128xbf16>
    %20 = arith.mulf %18, %18 : vector<128x128xbf16>
    %c0_12 = arith.constant 0 : index
    %c0_13 = arith.constant 0 : index
    %21 = vector.load %arg9[%c0_12, %c0_13] : memref<128x1xf32, #tpu.memory_space<vmem>>, vector<128x1xf32>
    %22 = arith.mulf %13, %21 : vector<128x1xf32>
    %cst_14 = arith.constant dense<0.000000e+00> : vector<128xf32>
    %23 = vector.multi_reduction <add>, %16, %cst_14 [1] : vector<128x128xf32> to vector<128xf32>
    %24 = vector.shape_cast %23 : vector<128xf32> to vector<128x1xf32>
    %25 = arith.addf %22, %24 : vector<128x1xf32>
    %c0_15 = arith.constant 0 : index
    %c0_16 = arith.constant 0 : index
    %26 = vector.load %arg9[%c0_15, %c0_16] : memref<128x1xf32, #tpu.memory_space<vmem>>, vector<128x1xf32>
    tpu.vector_store %arg9[%c0_15, %c0_16], %25 {strides = array<i32>} : memref<128x1xf32, #tpu.memory_space<vmem>>, vector<128x1xf32>,
    %c0_17 = arith.constant 0 : index
    %c0_18 = arith.constant 0 : index
    %27 = vector.load %arg10[%c0_17, %c0_18] : memref<128x128xf32, #tpu.memory_space<vmem>>, vector<128x128xf32>
    %28 = vector.broadcast %13 : vector<128x1xf32> to vector<128x128xf32>
    %29 = arith.mulf %28, %27 : vector<128x128xf32>
    %cst_19 = arith.constant dense<0.000000e+00> : vector<128x128xf32>
    %30 = tpu.matmul %19, %18, %cst_19 {dimension_numbers = #tpu.dot_dimension_numbers<[1], [0], [0], [1], [0, 0, 1, 1], [], []>} : vector<128x128xbf16>, vector<128x128xbf16>, vector<128x128xf32> -> vector<128x128xf32>
    %31 = arith.addf %29, %30 : vector<128x128xf32>
    %c0_20 = arith.constant 0 : index
    %c0_21 = arith.constant 0 : index
    %32 = vector.load %arg10[%c0_20, %c0_21] : memref<128x128xf32, #tpu.memory_space<vmem>>, vector<128x128xf32>
    tpu.vector_store %arg10[%c0_20, %c0_21], %31 {strides = array<i32>} : memref<128x128xf32, #tpu.memory_space<vmem>>, vector<128x128xf32>,
    %c0_22 = arith.constant 0 : index
    %c0_23 = arith.constant 0 : index
    %33 = vector.load %arg11[%c0_22, %c0_23] : memref<128x128xf32, #tpu.memory_space<vmem>>, vector<128x128xf32>
    %34 = vector.broadcast %13 : vector<128x1xf32> to vector<128x128xf32>
    %35 = arith.mulf %34, %33 : vector<128x128xf32>
    %cst_24 = arith.constant dense<0.000000e+00> : vector<128x128xf32>
    %36 = tpu.matmul %19, %20, %cst_24 {dimension_numbers = #tpu.dot_dimension_numbers<[1], [0], [0], [1], [0, 0, 1, 1], [], []>} : vector<128x128xbf16>, vector<128x128xbf16>, vector<128x128xf32> -> vector<128x128xf32>
    %37 = arith.addf %35, %36 : vector<128x128xf32>
    %c0_25 = arith.constant 0 : index
    %c0_26 = arith.constant 0 : index
    %38 = vector.load %arg11[%c0_25, %c0_26] : memref<128x128xf32, #tpu.memory_space<vmem>>, vector<128x128xf32>
    tpu.vector_store %arg11[%c0_25, %c0_26], %37 {strides = array<i32>} : memref<128x128xf32, #tpu.memory_space<vmem>>, vector<128x128xf32>,
    %c0_27 = arith.constant 0 : index
    %c0_28 = arith.constant 0 : index
    %39 = vector.load %arg8[%c0_27, %c0_28] : memref<128x1xf32, #tpu.memory_space<vmem>>, vector<128x1xf32>
    tpu.vector_store %arg8[%c0_27, %c0_28], %11 {strides = array<i32>} : memref<128x1xf32, #tpu.memory_space<vmem>>, vector<128x1xf32>,
    %c1_i32 = arith.constant 1 : i32
    %40 = arith.cmpi eq, %arg2, %c1_i32 : i32
    %41 = arith.extui %40 : i1 to i32
    %c0_i32_29 = arith.constant 0 : i32
    %42 = arith.cmpi ne, %41, %c0_i32_29 : i32
    scf.if %42 {
      %c0_30 = arith.constant 0 : index
      %c0_31 = arith.constant 0 : index
      %43 = vector.load %arg9[%c0_30, %c0_31] : memref<128x1xf32, #tpu.memory_space<vmem>>, vector<128x1xf32>
      %44 = tpu.reciprocal %43 {approx = true} : vector<128x1xf32> -> vector<128x1xf32>
      %c0_32 = arith.constant 0 : index
      %c0_33 = arith.constant 0 : index
      %45 = vector.load %arg10[%c0_32, %c0_33] : memref<128x128xf32, #tpu.memory_space<vmem>>, vector<128x128xf32>
      %46 = vector.broadcast %44 : vector<128x1xf32> to vector<128x128xf32>
      %47 = arith.mulf %45, %46 : vector<128x128xf32>
      %c0_34 = arith.constant 0 : index
      %c0_35 = arith.constant 0 : index
      %48 = vector.load %arg11[%c0_34, %c0_35] : memref<128x128xf32, #tpu.memory_space<vmem>>, vector<128x128xf32>
      %49 = vector.broadcast %44 : vector<128x1xf32> to vector<128x128xf32>
      %50 = arith.mulf %48, %49 : vector<128x128xf32>
      %51 = arith.mulf %47, %47 : vector<128x128xf32>
      %52 = arith.subf %50, %51 : vector<128x128xf32>
      %cst_36 = arith.constant 0.000000e+00 : f32
      %53 = vector.broadcast %cst_36 : f32 to vector<128x128xf32>
      %54 = arith.maximumf %52, %53 : vector<128x128xf32>
      %55 = math.sqrt %54 : vector<128x128xf32>
      %c0_37 = arith.constant 0 : index
      %c0_38 = arith.constant 0 : index
      %c0_39 = arith.constant 0 : index
      %56 = vector.load %arg6[%c0_37, %c0_38, %c0_39] : memref<1x128x128xbf16, #tpu.memory_space<vmem>>, vector<1x128x128xbf16>
      %57 = vector.shape_cast %56 : vector<1x128x128xbf16> to vector<128x128xbf16>
      %58 = arith.extf %57 : vector<128x128xbf16> to vector<128x128xf32>
      %59 = arith.mulf %55, %58 : vector<128x128xf32>
      %60 = arith.addf %59, %47 : vector<128x128xf32>
      %c0_40 = arith.constant 0 : index
      %c0_41 = arith.constant 0 : index
      %c0_42 = arith.constant 0 : index
      %61 = vector.load %arg7[%c0_40, %c0_41, %c0_42] : memref<1x128x128xf32, #tpu.memory_space<vmem>>, vector<1x128x128xf32>
      %62 = vector.shape_cast %61 : vector<1x128x128xf32> to vector<128x128xf32>
      %63 = vector.shape_cast %60 : vector<128x128xf32> to vector<1x128x128xf32>
      tpu.vector_store %arg7[%c0_40, %c0_41, %c0_42], %63 {strides = array<i32>} : memref<1x128x128xf32, #tpu.memory_space<vmem>>, vector<1x128x128xf32>,
    } else {
    }
    return
  }
  func.func @transform_0(%arg0: i32, %arg1: i32, %arg2: i32) -> (i32, i32, i32) {
    %c0_i32 = arith.constant 0 : i32
    %c0_i32_0 = arith.constant 0 : i32
    return %arg0, %arg1, %c0_i32 : i32, i32, i32
  }
  func.func @transform_1(%arg0: i32, %arg1: i32, %arg2: i32) -> (i32, i32, i32) {
    %c0_i32 = arith.constant 0 : i32
    %c0_i32_0 = arith.constant 0 : i32
    return %arg0, %arg2, %c0_i32 : i32, i32, i32
  }
  func.func @transform_2(%arg0: i32, %arg1: i32, %arg2: i32) -> (i32, i32, i32) {
    %c0_i32 = arith.constant 0 : i32
    %c0_i32_0 = arith.constant 0 : i32
    return %arg0, %arg2, %c0_i32 : i32, i32, i32
  }
  func.func @transform_3(%arg0: i32, %arg1: i32, %arg2: i32) -> (i32, i32, i32) {
    %c0_i32 = arith.constant 0 : i32
    %c0_i32_0 = arith.constant 0 : i32
    return %arg0, %arg1, %c0_i32 : i32, i32, i32
  }
  func.func @transform_4(%arg0: i32, %arg1: i32, %arg2: i32) -> (i32, i32, i32) {
    %c0_i32 = arith.constant 0 : i32
    %c0_i32_0 = arith.constant 0 : i32
    return %arg0, %arg1, %c0_i32 : i32, i32, i32
  }
}

</mosaic_0001>

<bundles_post_ra>
// kernel: adaattn_forward.1
= control target key start
LH: loop header
LB: loop body
LE: loop exit
PB: predicated region body
PF: predicated region fallthrough
CT: control target
= control target key end

     0   :  { %s2648_s15 = smov 0   ;;  %s2650_s16 = smov 0   ;;  %s3578_s0 = inlined_call_operand.vmem [shape: bf16[2,256,128], index: 0, kind: input, shape index: {}]   ;;  %s3579_s1 = inlined_call_operand.vmem [shape: bf16[2,256,128], index: 1, kind: input, shape index: {}]   ;;  %s3580_s2 = inlined_call_operand.vmem [shape: bf16[2,256,128], index: 2, kind: input, shape index: {}]   ;;  %s3581_s3 = inlined_call_operand.vmem [shape: bf16[2,256,128], index: 3, kind: input, shape index: {}]   ;;  %s3582_s4 = inlined_call_operand.vmem [shape: f32[2,256,128], index: 4, kind: output, shape index: {}]  }
   0x1   :  { %3584 = sst [smem:[#allocation7_spill]] %s3578_s0  ;;  %s2652_s17 = smov 0  }
   0x2   :  { %s2654_s18 = smov 0   ;;  %s2656_s19 = smov 0  }
   0x3   :  { %s2658_s20 = smov 0   ;;  %s2660_s21 = smov 0  }
   0x4 LB: > { %s26_s22 = sadd.s32 1, %s2605_s18  ;;  %s29_s23 = sadd.s32 1, %s2609_s19  ;;  %s2617_s21 = sphi %s2660_s21, %s14_s21   ;;  %s2613_s20 = sphi %s2658_s20, %s3593_s20   ;;  %s2609_s19 = sphi %s2656_s19, %s3592_s19   ;;  %s2605_s18 = sphi %s2654_s18, %s3591_s18   ;;  %s2601_s17 = sphi %s2652_s17, %s3590_s17   ;;  %s2597_s16 = sphi %s2650_s16, %s3589_s16   ;;  %s2593_s15 = sphi %s2648_s15, %s3588_s15  }
   0x5   : > { %p27_p0 = scmp.ge.s32.totalorder %s26_s22, 2  ;;  %p2112_p1 = scmp.ge.s32.totalorder %s2617_s21, 1 }
   0x6   : > { %p241_p2 = scmp.lt.s32.totalorder %s2617_s21, 9  ;;  %s33_s24 = sadd.s32 1, %s2613_s20 }
   0x7   : > { %s3595_s22 = smov (%p27_p0, %s26_s22), 0  ;;  %s3597_s23 = smov (!%p27_p0, %s29_s23), %s2609_s19 }
   0x8   : > { %p242_p3 = pnand %p2112_p1, %p241_p2  ;;  %p31_p4 = scmp.ge.s32.totalorder %s3597_s23, 2 }
   0xa   : > { %s3599_s23 = smov (%p31_p4, %s3597_s23), 0  ;;  %s3601_s24 = smov (!%p31_p4, %s33_s24), %s2613_s20 }
   0xb   : > { %p35_p5 = scmp.ge.s32.totalorder %s3601_s24, 2  ;;  %245 = sbr.rel (%p242_p3) target bundleno = 1096 (0x448), region = 36 }
   0xd   : > { %s3603_s24 = smov (%p35_p5, %s3601_s24), 0 }
  0x10   : > { %s2113_s25 = sshll.u32 %s2597_s16, 4  ;;  %p303_p6 = scmp.lt.s32.totalorder %s2601_s17, 1 }
  0x11   : > { %p305_p7 = scmp.lt.s32.totalorder %s2113_s25, 31  ;;  %s2116_s26 = sshll.u32 %s2593_s15, 4 }
  0x12   : > { %s3605_s17 = smov (!%p303_p6, %s2601_s17), 1  ;;  %p315_p8 = scmp.lt.s32.totalorder %s2116_s26, 31 }
  0x13   : > { %s3607_s25 = smov (!%p305_p7, %s2113_s25), 31  ;;  %s2114_s27 = sshll.u32 %s3605_s17, 5 }
  0x14   : > { %s308_s28 = sadd.s32 %s2114_s27, %s3607_s25  ;;  %s3585_s0 = sld [smem:[#allocation7_spill]] }
  0x15   : > { %s2115_s29 = sshll.u32 %s308_s28, 2  ;;  %s2127_s30 = sshll.u32 %s308_s28, 3 }
  0x16   : > { %s2701_s10 = scalar_lea.vmem %s3581_s3, %s2115_s29  ;;  %s3609_s26 = smov (!%p315_p8, %s2116_s26), 31 }
  0x17   : > { %s2706_s13 = scalar_lea.vmem %s3582_s4, %s2127_s30  ;;  %s318_s14 = sadd.s32 %s2114_s27, %s3609_s26 }
  0x18   : > { %s2118_s16 = sshll.u32 %s318_s14, 2  ;;  %p2128_p9 = scmp.ne.s32.totalorder %s2593_s15, 0 }
  0x19   : > { %s2711_s28 = scalar_lea.vmem %s3579_s1, %s2118_s16 }
  0x1a   : > { %s2696_s7 = scalar_lea.vmem %s3585_s0, %s2115_s29  ;;  %s2716_s0 = scalar_lea.vmem %s3580_s2, %s2118_s16 }
  0x1b   : > { %356 = sbr.rel (%p2128_p9) target bundleno = 65 (0x41), region = 40 }
  0x20   : > { %vm357_vm0 = vcmask 7168   ;;  %v2619_v0 = vmov -inf   ;;  %v2620_v1 = vmov 0.0  }
  0x21   : > { %358 = vst.msk [vmem:[#allocation2] sm:$0xff] %vm357_vm0, %v2619_v0  ;;  %359 = vst.msk [vmem:[#allocation2 + $0x8] sm:$0xff] %vm357_vm0, %v2619_v0 }
  0x22   : > { %360 = vst.msk [vmem:[#allocation2 + $0x10] sm:$0xff] %vm357_vm0, %v2619_v0  ;;  %361 = vst.msk [vmem:[#allocation2 + $0x18] sm:$0xff] %vm357_vm0, %v2619_v0 }
  0x23   : > { %362 = vst.msk [vmem:[#allocation2 + $0x20] sm:$0xff] %vm357_vm0, %v2619_v0  ;;  %363 = vst.msk [vmem:[#allocation2 + $0x28] sm:$0xff] %vm357_vm0, %v2619_v0 }
  0x24   : > { %364 = vst.msk [vmem:[#allocation2 + $0x30] sm:$0xff] %vm357_vm0, %v2619_v0  ;;  %365 = vst.msk [vmem:[#allocation2 + $0x38] sm:$0xff] %vm357_vm0, %v2619_v0 }
  0x25   : > { %366 = vst.msk [vmem:[#allocation2 + $0x40] sm:$0xff] %vm357_vm0, %v2619_v0  ;;  %367 = vst.msk [vmem:[#allocation2 + $0x48] sm:$0xff] %vm357_vm0, %v2619_v0 }
  0x26   : > { %368 = vst.msk [vmem:[#allocation2 + $0x50] sm:$0xff] %vm357_vm0, %v2619_v0  ;;  %369 = vst.msk [vmem:[#allocation2 + $0x58] sm:$0xff] %vm357_vm0, %v2619_v0 }
  0x27   : > { %370 = vst.msk [vmem:[#allocation2 + $0x60] sm:$0xff] %vm357_vm0, %v2619_v0  ;;  %371 = vst.msk [vmem:[#allocation2 + $0x68] sm:$0xff] %vm357_vm0, %v2619_v0 }
  0x28   : > { %372 = vst.msk [vmem:[#allocation2 + $0x70] sm:$0xff] %vm357_vm0, %v2619_v0  ;;  %373 = vst.msk [vmem:[#allocation2 + $0x78] sm:$0xff] %vm357_vm0, %v2619_v0 }
  0x29   : > { %374 = vst.msk [vmem:[#allocation3] sm:$0xff] %vm357_vm0, %v2620_v1  ;;  %375 = vst.msk [vmem:[#allocation3 + $0x8] sm:$0xff] %vm357_vm0, %v2620_v1 }
  0x2a   : > { %376 = vst.msk [vmem:[#allocation3 + $0x10] sm:$0xff] %vm357_vm0, %v2620_v1  ;;  %377 = vst.msk [vmem:[#allocation3 + $0x18] sm:$0xff] %vm357_vm0, %v2620_v1 }
  0x2b   : > { %378 = vst.msk [vmem:[#allocation3 + $0x20] sm:$0xff] %vm357_vm0, %v2620_v1  ;;  %379 = vst.msk [vmem:[#allocation3 + $0x28] sm:$0xff] %vm357_vm0, %v2620_v1 }
  0x2c   : > { %380 = vst.msk [vmem:[#allocation3 + $0x30] sm:$0xff] %vm357_vm0, %v2620_v1  ;;  %381 = vst.msk [vmem:[#allocation3 + $0x38] sm:$0xff] %vm357_vm0, %v2620_v1 }
  0x2d   : > { %382 = vst.msk [vmem:[#allocation3 + $0x40] sm:$0xff] %vm357_vm0, %v2620_v1  ;;  %383 = vst.msk [vmem:[#allocation3 + $0x48] sm:$0xff] %vm357_vm0, %v2620_v1 }
  0x2e   : > { %384 = vst.msk [vmem:[#allocation3 + $0x50] sm:$0xff] %vm357_vm0, %v2620_v1  ;;  %385 = vst.msk [vmem:[#allocation3 + $0x58] sm:$0xff] %vm357_vm0, %v2620_v1 }
  0x2f   : > { %386 = vst.msk [vmem:[#allocation3 + $0x60] sm:$0xff] %vm357_vm0, %v2620_v1  ;;  %387 = vst.msk [vmem:[#allocation3 + $0x68] sm:$0xff] %vm357_vm0, %v2620_v1 }
  0x30   : > { %388 = vst.msk [vmem:[#allocation3 + $0x70] sm:$0xff] %vm357_vm0, %v2620_v1  ;;  %389 = vst.msk [vmem:[#allocation3 + $0x78] sm:$0xff] %vm357_vm0, %v2620_v1 }
  0x31   : > { %390 = vst [vmem:[#allocation4 + $0x30] sm:$0xff] %v2620_v1  ;;  %391 = vst [vmem:[#allocation4] sm:$0xff] %v2620_v1 }
  0x32   : > { %392 = vst [vmem:[#allocation4 + $0x58] sm:$0xff] %v2620_v1  ;;  %393 = vst [vmem:[#allocation4 + $0x18] sm:$0xff] %v2620_v1 }
  0x33   : > { %394 = vst [vmem:[#allocation4 + $0x50] sm:$0xff] %v2620_v1  ;;  %395 = vst [vmem:[#allocation4 + $0x68] sm:$0xff] %v2620_v1 }
  0x34   : > { %396 = vst [vmem:[#allocation4 + $0x8] sm:$0xff] %v2620_v1  ;;  %397 = vst [vmem:[#allocation4 + $0x48] sm:$0xff] %v2620_v1 }
  0x35   : > { %398 = vst [vmem:[#allocation4 + $0x40] sm:$0xff] %v2620_v1  ;;  %399 = vst [vmem:[#allocation4 + $0x20] sm:$0xff] %v2620_v1 }
  0x36   : > { %400 = vst [vmem:[#allocation4 + $0x10] sm:$0xff] %v2620_v1  ;;  %401 = vst [vmem:[#allocation4 + $0x38] sm:$0xff] %v2620_v1 }
  0x37   : > { %402 = vst [vmem:[#allocation4 + $0x60] sm:$0xff] %v2620_v1  ;;  %403 = vst [vmem:[#allocation4 + $0x70] sm:$0xff] %v2620_v1 }
  0x38   : > { %404 = vst [vmem:[#allocation4 + $0x78] sm:$0xff] %v2620_v1  ;;  %405 = vst [vmem:[#allocation4 + $0x28] sm:$0xff] %v2620_v1 }
  0x39   : > { %406 = vst [vmem:[#allocation5 + $0x28] sm:$0xff] %v2620_v1  ;;  %407 = vst [vmem:[#allocation5 + $0x68] sm:$0xff] %v2620_v1 }
  0x3a   : > { %408 = vst [vmem:[#allocation5 + $0x10] sm:$0xff] %v2620_v1  ;;  %409 = vst [vmem:[#allocation5 + $0x40] sm:$0xff] %v2620_v1 }
  0x3b   : > { %410 = vst [vmem:[#allocation5 + $0x48] sm:$0xff] %v2620_v1  ;;  %411 = vst [vmem:[#allocation5 + $0x30] sm:$0xff] %v2620_v1 }
  0x3c   : > { %412 = vst [vmem:[#allocation5 + $0x70] sm:$0xff] %v2620_v1  ;;  %413 = vst [vmem:[#allocation5 + $0x38] sm:$0xff] %v2620_v1 }
  0x3d   : > { %414 = vst [vmem:[#allocation5 + $0x20] sm:$0xff] %v2620_v1  ;;  %415 = vst [vmem:[#allocation5 + $0x78] sm:$0xff] %v2620_v1 }
  0x3e   : > { %416 = vst [vmem:[#allocation5 + $0x18] sm:$0xff] %v2620_v1  ;;  %417 = vst [vmem:[#allocation5 + $0x58] sm:$0xff] %v2620_v1 }
  0x3f   : > { %418 = vst [vmem:[#allocation5] sm:$0xff] %v2620_v1  ;;  %419 = vst [vmem:[#allocation5 + $0x8] sm:$0xff] %v2620_v1 }
  0x40   : > { %420 = vst [vmem:[#allocation5 + $0x60] sm:$0xff] %v2620_v1  ;;  %421 = vst [vmem:[#allocation5 + $0x50] sm:$0xff] %v2620_v1 }
  0x41 PF: > { %v2409_v2 = vld [vmem:[%s2711_s28 + $0x38] sm:$0xff]   ;;  %v2410_v3 = vld [vmem:[%s2711_s28 + $0x30] sm:$0xff]   ;;  %v2411_v4 = vld [vmem:[%s2711_s28 + $0x28] sm:$0xff]   ;;  %v2621_v25 = vmov 0   ;;  %vm1007_vm1 = vcmask 7168   ;;  %p2161_p10 = scmp.ne.s32.totalorder %s2593_s15, 1 }
  0x42   : > { %2251 = vmatprep.subr.bf16.mxu0 %v2409_v2  ;;  %v2417_v5 = vld [vmem:[%s2696_s7] sm:$0xff]   ;;  %v2413_v7 = vld [vmem:[%s2711_s28 + $0x18] sm:$0xff]   ;;  %v2414_v8 = vld [vmem:[%s2711_s28 + $0x10] sm:$0xff]   ;;  %2408 = vset.pattern.permute.xlu1 %v2621_v25 }
  0x43   : > { %2252 = vmatpush3.bf16.xpose.msra.mxu0 %v2409_v2  ;;  %2267 = vmatprep.mubr.bf16.mxu0 %v2417_v5  ;;  %v2412_v6 = vld [vmem:[%s2711_s28 + $0x20] sm:$0xff]   ;;  %v2415_v9 = vld [vmem:[%s2711_s28 + $0x8] sm:$0xff]   ;;  %v2419_v12 = vld [vmem:[%s2696_s7 + $0x10] sm:$0xff]  }
  0x44   : > { %2253 = vmatprep.subr.bf16.mxu0 %v2410_v3  ;;  %v2416_v10 = vld [vmem:[%s2711_s28] sm:$0xff]   ;;  %v2418_v11 = vld [vmem:[%s2696_s7 + $0x8] sm:$0xff]   ;;  %v2420_v13 = vld [vmem:[%s2696_s7 + $0x18] sm:$0xff]   ;;  %2407 = vset.pattern.permute.xlu0 %v2621_v25 }
  0x45   : > { %v2421_v14 = vld [vmem:[%s2696_s7 + $0x20] sm:$0xff]   ;;  %v2422_v15 = vld [vmem:[%s2696_s7 + $0x28] sm:$0xff]   ;;  %v2423_v16 = vld [vmem:[%s2696_s7 + $0x30] sm:$0xff]  }
  0x46   : > { %v2424_v17 = vld [vmem:[%s2696_s7 + $0x38] sm:$0xff]   ;;  %v2824_v38 = vld [vmem:[%s2716_s0 + $0x30] sm:$0xf]  ;;  %v2827_v39 = vld [vmem:[%s2716_s0 + $0x34] sm:$0xf] }
  0x47   : > { %v2816_v35 = vld [vmem:[%s2716_s0 + $0x38] sm:$0xf]  ;;  %v2819_v36 = vld [vmem:[%s2716_s0 + $0x3c] sm:$0xf]  ;;  %v2829_v40 = vld [vmem:[#allocation2 + $0x10] sm:$0xff]  ;;  %v2151_v41 = vcombine.low %v2824_v38, %v2827_v39 }
  0x48   : > { %v2152_v37 = vcombine.low %v2816_v35, %v2819_v36  ;;  %v2833_v43 = vld [vmem:[#allocation2] sm:$0xff]  ;;  %v2839_v45 = vld [vmem:[%s2716_s0 + $0x28] sm:$0xf]  ;;  %v2842_v46 = vld [vmem:[%s2716_s0 + $0x2c] sm:$0xf] }
  0x49   : > { %v2844_v48 = vld [vmem:[#allocation2 + $0x18] sm:$0xff]  ;;  %v2150_v49 = vcombine.low %v2839_v45, %v2842_v46  ;;  %v2854_v52 = vld [vmem:[#allocation2 + $0x8] sm:$0xff]  ;;  %v2863_v54 = vld [vmem:[%s2716_s0 + $0x20] sm:$0xf] }
  0x4a   : > { %2283 = vmatprep.subr.bf16.mxu1 %v2152_v37  ;;  %v2866_v55 = vld [vmem:[%s2716_s0 + $0x24] sm:$0xf]  ;;  %v2881_v60 = vld [vmem:[%s2716_s0 + $0x18] sm:$0xf]  ;;  %v2884_v61 = vld [vmem:[%s2716_s0 + $0x1c] sm:$0xf] }
  0x4b   : > { %2254 = vmatpush3.bf16.xpose.msra.mxu0 %v2410_v3  ;;  %2284 = vmatpush3.bf16.msra.mxu1 %v2152_v37  ;;  %v2149_v57 = vcombine.low %v2863_v54, %v2866_v55  ;;  %v2876_v59 = vld [vmem:[#allocation2 + $0x20] sm:$0xff]  ;;  %v2886_v63 = vld [vmem:[#allocation2 + $0x38] sm:$0xff]  ;;  %v2148_v0 = vcombine.low %v2881_v60, %v2884_v61  ;;  %v2894_v3 = vld [vmem:[#allocation2 + $0x30] sm:$0xff] }
  0x4c   : > { %2255 = vmatprep.subr.bf16.mxu0 %v2411_v4  ;;  %2285 = vmatprep.subr.bf16.mxu1 %v2151_v41  ;;  %v2902_v5 = vld [vmem:[%s2716_s0 + $0x10] sm:$0xf] }
  0x4f   : > { %2286 = vmatpush3.bf16.msra.mxu1 %v2151_v41 }
  0x50   : > { %2287 = vmatprep.subr.bf16.mxu1 %v2150_v49 }
  0x53   : > { %2256 = vmatpush3.bf16.xpose.msra.mxu0 %v2411_v4  ;;  %2288 = vmatpush3.bf16.msra.mxu1 %v2150_v49 }
  0x54   : > { %2257 = vmatprep.subr.bf16.mxu0 %v2412_v6  ;;  %2289 = vmatprep.subr.bf16.mxu1 %v2149_v57 }
  0x57   : > { %2290 = vmatpush3.bf16.msra.mxu1 %v2149_v57 }
  0x58   : > { %2291 = vmatprep.subr.bf16.mxu1 %v2148_v0 }
  0x5b   : > { %2258 = vmatpush3.bf16.xpose.msra.mxu0 %v2412_v6  ;;  %2292 = vmatpush3.bf16.msra.mxu1 %v2148_v0  ;;  %v2905_v6 = vld [vmem:[%s2716_s0 + $0x14] sm:$0xf] }
  0x5c   : > { %2259 = vmatprep.subr.bf16.mxu0 %v2413_v7 }
  0x63   : > { %2260 = vmatpush3.bf16.xpose.msra.mxu0 %v2413_v7 }
  0x64   : > { %2261 = vmatprep.subr.bf16.mxu0 %v2414_v8 }
  0x6b   : > { %2262 = vmatpush3.bf16.xpose.msra.mxu0 %v2414_v8  ;;  %v2907_v8 = vld [vmem:[#allocation2 + $0x28] sm:$0xff] }
  0x6c   : > { %2263 = vmatprep.subr.bf16.mxu0 %v2415_v9 }
  0x73   : > { %2264 = vmatpush3.bf16.xpose.msra.mxu0 %v2415_v9  ;;  %v2147_v9 = vcombine.low %v2902_v5, %v2905_v6 }
  0x74   : > { %2265 = vmatprep.subr.bf16.mxu0 %v2416_v10 }
  0x75   : > { %2293 = vmatprep.subr.bf16.mxu1 %v2147_v9 }
  0x76   : > { %2294 = vmatpush3.bf16.msra.mxu1 %v2147_v9 }
  0x7b   : > { %2266 = vmatpush3.bf16.xpose.msra.mxu0 %v2416_v10 }
  0x82   : > { %2268 = vmatmul.mubr.bf16.vlgmr.msra.gmra.mxu0 %v2418_v11 }
  0x83   : > { %2271 = vmatprep.mubr.bf16.mxu0 %v2419_v12  ;;  %v2916_v12 = vld [vmem:[#allocation2 + $0x40] sm:$0xff] }
  0x8a   : > { %2272 = vmatmul.mubr.bf16.gmra.mxu0 %v2420_v13 }
  0x8b   : > { %2275 = vmatprep.mubr.bf16.mxu0 %v2421_v14  ;;  %v2925_v14 = vld [vmem:[%s2716_s0 + $0x8] sm:$0xf] }
  0x92   : > { %2276 = vmatmul.mubr.bf16.gmra.mxu0 %v2422_v15  ;;  %v2928_v15 = vld [vmem:[%s2716_s0 + $0xc] sm:$0xf] }
  0x93   : > { %2279 = vmatprep.mubr.bf16.mxu0 %v2423_v16  ;;  %v2146_v25 = vcombine.low %v2925_v14, %v2928_v15 }
  0x95   : > { %2295 = vmatprep.subr.bf16.mxu1 %v2146_v25 }
  0x96   : > { %2296 = vmatpush3.bf16.msra.mxu1 %v2146_v25  ;;  %v2974_v25 = vld [vmem:[#allocation2 + $0x78] sm:$0xff] }
  0x9a   : > { %2280 = vmatmul.mubr.bf16.gmra.mxu0 %v2424_v17  ;;  %v2930_v17 = vld [vmem:[#allocation2 + $0x58] sm:$0xff] }
 0x142   : > { %v2767_v18 = vpop.f32.mrf.mxu0 }
 0x143   : > { %667 = vmax.xlane.f32.xlu1 %v2767_v18 }
 0x144   : > { %v2770_v19 = vpop.f32.mrf.mxu0 }
 0x145   : > { %663 = vmax.xlane.f32.xlu0 %v2770_v19 }
 0x146   : > { %v2773_v20 = vpop.f32.mrf.mxu0 }
 0x147   : > { %669 = vmax.xlane.f32.xlu1 %v2773_v20 }
 0x148   : > { %v2776_v21 = vpop.f32.mrf.mxu0 }
 0x149   : > { %665 = vmax.xlane.f32.xlu0 %v2776_v21 }
 0x14a   : > { %v2779_v22 = vpop.f32.mrf.mxu0 }
 0x14c   : > { %v2781_v23 = vpop.f32.mrf.mxu0 }
 0x14d   : > { %671 = vmax.xlane.f32.xlu0 %v2781_v23 }
 0x14e   : > { %v2784_v24 = vpop.f32.mrf.mxu0 }
 0x14f   : > { %677 = vmax.xlane.f32.xlu1 %v2784_v24 }
 0x150   : > { %v2787_v26 = vpop.f32.mrf.mxu0 }
 0x151   : > { %675 = vmax.xlane.f32.xlu0 %v2779_v22 }
 0x152   : > { %v2790_v27 = vpop.f32.mrf.mxu0 }
 0x153   : > { %673 = vmax.xlane.f32.xlu1 %v2787_v26 }
 0x154   : > { %v2793_v28 = vpop.f32.mrf.mxu0 }
 0x155   : > { %679 = vmax.xlane.f32.xlu0 %v2793_v28 }
 0x156   : > { %v2796_v29 = vpop.f32.mrf.mxu0 }
 0x157   : > { %685 = vmax.xlane.f32.xlu1 %v2796_v29 }
 0x158   : > { %v2799_v30 = vpop.f32.mrf.mxu0 }
 0x159   : > { %683 = vmax.xlane.f32.xlu0 %v2790_v27 }
 0x15a   : > { %v2802_v31 = vpop.f32.mrf.mxu0 }
 0x15b   : > { %3586 = vst [vmem:[#allocation6_spill] sm:$0xff] %v2802_v31  ;;  %681 = vmax.xlane.f32.xlu1 %v2799_v30 }
 0x15c   : > { %v2805_v32 = vpop.f32.mrf.mxu0 }
 0x15d   : > { %687 = vmax.xlane.f32.xlu0 %v2805_v32 }
 0x15e   : > { %v2808_v33 = vpop.f32.mrf.mxu0 }
 0x15f   : > { %693 = vmax.xlane.f32.xlu1 %v2808_v33 }
 0x160   : > { %v2812_v34 = vpop.f32.mrf.mxu0 }
 0x161   : > { %691 = vmax.xlane.f32.xlu0 %v2802_v31 }
 0x163   : > { %689 = vmax.xlane.f32.xlu1 %v2812_v34 }
 0x1cc   : > { %v668_v42 = vpop.xlane.xlu1 %667 }
 0x1cd   : > { %v2836_v44 = vmax.f32 %v2829_v40, %v668_v42  ;;  %v2939_v42 = vld [vmem:[#allocation2 + $0x50] sm:$0xff] }
 0x1ce   : > { %v664_v47 = vpop.xlane.xlu0 %663 }
 0x1cf   : > { %1524 = vst.msk [vmem:[#allocation2 + $0x10] sm:$0xff] %vm1007_vm1, %v2836_v44  ;;  %v2851_v50 = vmax.f32 %v2833_v43, %v664_v47  ;;  %771 = vperm.xlu1 %2408, %v2836_v44  }
 0x1d0   : > { %v670_v51 = vpop.xlane.xlu1 %669 }
 0x1d1   : > { %1522 = vst.msk [vmem:[#allocation2] sm:$0xff] %vm1007_vm1, %v2851_v50  ;;  %v2859_v53 = vmax.f32 %v2844_v48, %v670_v51  ;;  %761 = vperm.xlu0 %2407, %v2851_v50   ;;  %v711_v47 = vsub.f32 %v2833_v43, %v2851_v50  ;;  %v2950_v51 = vld [vmem:[%s2716_s0] sm:$0xf] }
 0x1d2   : > { %v666_v56 = vpop.xlane.xlu0 %665 }
 0x1d3   : > { %1525 = vst.msk [vmem:[#allocation2 + $0x18] sm:$0xff] %vm1007_vm1, %v2859_v53  ;;  %v2873_v58 = vmax.f32 %v2854_v52, %v666_v56  ;;  %776 = vperm.xlu1 %2408, %v2859_v53   ;;  %v2953_v56 = vld [vmem:[%s2716_s0 + $0x4] sm:$0xf]  ;;  %v714_v9 = vsub.f32 %v2844_v48, %v2859_v53 }
 0x1d4   : > { %v2145_v0 = vcombine.low %v2950_v51, %v2953_v56 }
 0x1d5   : > { %1523 = vst.msk [vmem:[#allocation2 + $0x8] sm:$0xff] %vm1007_vm1, %v2873_v58 }
 0x1d6   : > { %v672_v62 = vpop.xlane.xlu0 %671  ;;  %2297 = vmatprep.subr.bf16.mxu1 %v2145_v0 }
 0x1d7   : > { %v2891_v1 = vmax.f32 %v2876_v59, %v672_v62  ;;  %766 = vperm.xlu1 %2408, %v2873_v58   ;;  %v2955_v62 = vld [vmem:[#allocation2 + $0x48] sm:$0xff]  ;;  %2298 = vmatpush3.bf16.msra.mxu1 %v2145_v0  ;;  %v733_v0 = vmul.f32 1.442695, %v714_v9 }
 0x1d8   : > { %v678_v2 = vpop.xlane.xlu1 %677 }
 0x1d9   : > { %1526 = vst.msk [vmem:[#allocation2 + $0x20] sm:$0xff] %vm1007_vm1, %v2891_v1  ;;  %v2899_v4 = vmax.f32 %v2886_v63, %v678_v2  ;;  %v2964_v2 = vld [vmem:[#allocation2 + $0x60] sm:$0xff] }
 0x1da   : > { %v676_v7 = vpop.xlane.xlu0 %675 }
 0x1db   : > { %1529 = vst.msk [vmem:[#allocation2 + $0x38] sm:$0xff] %vm1007_vm1, %v2899_v4  ;;  %v2914_v10 = vmax.f32 %v2894_v3, %v676_v7  ;;  %v727_v7 = vmul.f32 1.442695, %v711_v47  ;;  %v718_v53 = vsub.f32 %v2886_v63, %v2899_v4  ;;  %v926_v63 = vmul.bf16 %v2819_v36, %v2819_v36 }
 0x1dc   : > { %v674_v11 = vpop.xlane.xlu1 %673 }
 0x1dd   : > { %1528 = vst.msk [vmem:[#allocation2 + $0x30] sm:$0xff] %vm1007_vm1, %v2914_v10  ;;  %v2921_v13 = vmax.f32 %v2907_v8, %v674_v11  ;;  %791 = vperm.xlu1 %2408, %v2914_v10   ;;  %2433 = vpow2.f32 %v727_v7  ;;  %v713_v7 = vsub.f32 %v2829_v40, %v2836_v44 }
 0x1de   : > { %v680_v16 = vpop.xlane.xlu0 %679  ;;  %2435 = vpow2.f32 %v733_v0  ;;  %v923_v0 = vmul.bf16 %v2824_v38, %v2824_v38 }
 0x1df   : > { %1527 = vst.msk [vmem:[#allocation2 + $0x28] sm:$0xff] %vm1007_vm1, %v2921_v13  ;;  %v2937_v37 = vmax.f32 %v2916_v12, %v680_v16  ;;  %v716_v36 = vsub.f32 %v2907_v8, %v2921_v13 }
 0x1e0   : > { %v686_v41 = vpop.xlane.xlu1 %685 }
 0x1e1   : > { %1530 = vst.msk [vmem:[#allocation2 + $0x40] sm:$0xff] %vm1007_vm1, %v2937_v37  ;;  %v2946_v49 = vmax.f32 %v2930_v17, %v686_v41  ;;  %781 = vperm.xlu1 %2408, %v2891_v1   ;;  %v712_v41 = vsub.f32 %v2854_v52, %v2873_v58  ;;  %v737_v8 = vmul.f32 1.442695, %v716_v36 }
 0x1e2   : > { %v684_v57 = vpop.xlane.xlu0 %683 }
 0x1e3   : > { %1533 = vst.msk [vmem:[#allocation2 + $0x58] sm:$0xff] %vm1007_vm1, %v2946_v49  ;;  %v2962_v43 = vmax.f32 %v2939_v42, %v684_v57  ;;  %v2986_v57 = vld [vmem:[#allocation2 + $0x70] sm:$0xff]  ;;  %v729_v9 = vmul.f32 1.442695, %v712_v41  ;;  %v731_v41 = vmul.f32 1.442695, %v713_v7  ;;  %v922_v7 = vmul.bf16 %v2842_v46, %v2842_v46 }
 0x1e4   : > { %v682_v50 = vpop.xlane.xlu1 %681  ;;  %v920_v46 = vmul.bf16 %v2866_v55, %v2866_v55  ;;  %v918_v55 = vmul.bf16 %v2884_v61, %v2884_v61  ;;  %v916_v61 = vmul.bf16 %v2905_v6, %v2905_v6 }
 0x1e5   : > { %1532 = vst.msk [vmem:[#allocation2 + $0x50] sm:$0xff] %vm1007_vm1, %v2962_v43  ;;  %v2971_v11 = vmax.f32 %v2955_v62, %v682_v50  ;;  %786 = vperm.xlu1 %2408, %v2921_v13   ;;  %v660_v50 = vld [vmem:[#allocation2 + $0x68] sm:$0xff]  ;;  %2437 = vpow2.f32 %v729_v9  ;;  %v722_v13 = vsub.f32 %v2930_v17, %v2946_v49 }
 0x1e6   : > { %v688_v16 = vpop.xlane.xlu0 %687 }
 0x1e7   : > { %1531 = vst.msk [vmem:[#allocation2 + $0x48] sm:$0xff] %vm1007_vm1, %v2971_v11  ;;  %v2981_v48 = vmax.f32 %v2964_v2, %v688_v16  ;;  %806 = vperm.xlu0 %2407, %v2971_v11   ;;  %v925_v16 = vmul.bf16 %v2816_v35, %v2816_v35  ;;  %v749_v17 = vmul.f32 1.442695, %v722_v13 }
 0x1e8   : > { %v694_v47 = vpop.xlane.xlu1 %693 }
 0x1e9   : > { %1534 = vst.msk [vmem:[#allocation2 + $0x60] sm:$0xff] %vm1007_vm1, %v2981_v48  ;;  %v2991_v52 = vmax.f32 %v2974_v25, %v694_v47  ;;  %796 = vperm.xlu1 %2408, %v2899_v4   ;;  %v741_v47 = vmul.f32 1.442695, %v718_v53  ;;  %v3018_v53 = vcombine.low %v925_v16, %v926_v63  ;;  %v717_v16 = vsub.f32 %v2894_v3, %v2914_v10 }
 0x1ea   : > { %v692_v58 = vpop.xlane.xlu0 %691  ;;  %v3036_v38 = vpop.eup %2433  ;;  %v721_v10 = vsub.f32 %v2939_v42, %v2962_v43  ;;  %v719_v42 = vsub.f32 %v2916_v12, %v2937_v37 }
 0x1eb   : > { %v726_v31 = vsub.f32 %v2974_v25, %v2991_v52  ;;  %1537 = vst.msk [vmem:[#allocation2 + $0x78] sm:$0xff] %vm1007_vm1, %v2991_v52  ;;  %v3005_v4 = vmax.f32 %v2986_v57, %v692_v58  ;;  %816 = vperm.xlu0 %2407, %v2946_v49   ;;  %v715_v58 = vsub.f32 %v2876_v59, %v2891_v1  ;;  %2439 = vpow2.f32 %v741_v47  ;;  %v3048_v47 = vpop.eup %2435 }
 0x1ec   : > { %v690_v35 = vpop.xlane.xlu1 %689  ;;  %2315 = vmatprep.subr.bf16.mxu1 %v3018_v53  ;;  %v924_v59 = vmul.bf16 %v2827_v39, %v2827_v39  ;;  %2441 = vpow2.f32 %v731_v41  ;;  %v720_v49 = vsub.f32 %v2955_v62, %v2971_v11  ;;  %v921_v39 = vmul.bf16 %v2839_v45, %v2839_v45 }
 0x1ed   : > { %v725_v40 = vsub.f32 %v2986_v57, %v3005_v4  ;;  %1536 = vst.msk [vmem:[#allocation2 + $0x70] sm:$0xff] %vm1007_vm1, %v3005_v4  ;;  %v708_v44 = vmax.f32 %v660_v50, %v690_v35  ;;  %801 = vperm.xlu1 %2408, %v2937_v37   ;;  %v735_v1 = vmul.f32 1.442695, %v715_v58  ;;  %2443 = vpow2.f32 %v737_v8 }
 0x1ee   : > { %v3031_v63 = vcombine.low %v923_v0, %v924_v59  ;;  %v739_v3 = vmul.f32 1.442695, %v717_v16  ;;  %v3045_v9 = vcombine.low %v921_v39, %v922_v7  ;;  %v745_v62 = vmul.f32 1.442695, %v720_v49 }
 0x1ef   : > { %1535 = vst.msk [vmem:[#allocation2 + $0x68] sm:$0xff] %vm1007_vm1, %v708_v44  ;;  %826 = vperm.xlu0 %2407, %v708_v44   ;;  %2445 = vpow2.f32 %v735_v1  ;;  %v724_v11 = vsub.f32 %v660_v50, %v708_v44  ;;  %v919_v45 = vmul.bf16 %v2863_v54, %v2863_v54  ;;  %v917_v54 = vmul.bf16 %v2881_v60, %v2881_v60 }
 0x1f0   : > { %2447 = vpow2.f32 %v749_v17  ;;  %v743_v12 = vmul.f32 1.442695, %v719_v42  ;;  %v723_v37 = vsub.f32 %v2964_v2, %v2981_v48  ;;  %v915_v60 = vmul.bf16 %v2902_v5, %v2902_v5 }
 0x1f1   : > { %811 = vperm.xlu1 %2408, %v2962_v43   ;;  %2449 = vpow2.f32 %v739_v3  ;;  %v747_v43 = vmul.f32 1.442695, %v721_v10  ;;  %v3059_v50 = vcombine.low %v919_v45, %v920_v46  ;;  %v753_v44 = vmul.f32 1.442695, %v724_v11 }
 0x1f2   : > { %v3057_v35 = vpop.eup %2437  ;;  %2451 = vpow2.f32 %v745_v62  ;;  %v3073_v58 = vcombine.low %v917_v54, %v918_v55  ;;  %v751_v13 = vmul.f32 1.442695, %v723_v37  ;;  %v913_v59 = vmul.bf16 %v2925_v14, %v2925_v14 }
 0x1f3   : > { %836 = vperm.xlu0 %2407, %v2991_v52   ;;  %2453 = vpow2.f32 %v747_v43  ;;  %v914_v5 = vmul.bf16 %v2928_v15, %v2928_v15  ;;  %v911_v17 = vmul.bf16 %v2950_v51, %v2950_v51  ;;  %v912_v14 = vmul.bf16 %v2953_v56, %v2953_v56 }
 0x1f4   : > { %2455 = vpow2.f32 %v753_v44 }
 0x1f5   : > { %821 = vperm.xlu1 %2408, %v2981_v48   ;;  %2457 = vpow2.f32 %v743_v12  ;;  %v3085_v48 = vcombine.low %v915_v60, %v916_v61  ;;  %v3097_v1 = vcombine.low %v913_v59, %v914_v5  ;;  %v3109_v49 = vcombine.low %v911_v17, %v912_v14 }
 0x1f6   : > { %2459 = vpow2.f32 %v751_v13 }
 0x1f7   : > { %1042 = vperm.xlu0 %2407, %v3036_v38  }
 0x1f8   : > { %v3061_v36 = vpop.eup %2439 }
 0x1f9   : > { %831 = vperm.xlu1 %2408, %v3005_v4   ;;  %v3071_v41 = vpop.eup %2441 }
 0x1fa   : > { %v3076_v8 = vpop.eup %2443 }
 0x1fb   : > { %1057 = vperm.xlu0 %2407, %v3048_v47  }
 0x1fc   : > { %v3083_v2 = vpop.eup %2445 }
 0x1fd   : > { %1047 = vperm.xlu1 %2408, %v3057_v35   ;;  %v3088_v0 = vpop.eup %2447 }
 0x1fe   : > { %v3095_v6 = vpop.eup %2449 }
 0x1ff   : > { %1077 = vperm.xlu0 %2407, %v3061_v36   ;;  %v3100_v16 = vpop.eup %2451 }
 0x200   : > { %v3107_v15 = vpop.eup %2453 }
 0x201   : > { %1052 = vperm.xlu1 %2408, %v3071_v41   ;;  %v3112_v39 = vpop.eup %2455 }
 0x202   : > { %v3115_v7 = vpop.eup %2457 }
 0x203   : > { %1067 = vperm.xlu0 %2407, %v3076_v8   ;;  %v3118_v51 = vpop.eup %2459 }
 0x205   : > { %1062 = vperm.xlu1 %2408, %v3083_v2  }
 0x207   : > { %1097 = vperm.xlu0 %2407, %v3088_v0  }
 0x209   : > { %1072 = vperm.xlu1 %2408, %v3095_v6  }
 0x20b   : > { %1087 = vperm.xlu0 %2407, %v3100_v16  }
 0x20d   : > { %1092 = vperm.xlu1 %2408, %v3107_v15  }
 0x20f   : > { %1107 = vperm.xlu0 %2407, %v3112_v39  }
 0x211   : > { %1082 = vperm.xlu1 %2408, %v3115_v7  }
 0x215   : > { %1102 = vperm.xlu1 %2408, %v3118_v51  }
 0x24a   : > { %v772_v56 = vpop.permute.xlu1 %771 }
 0x24b   : > { %v841_v3 = vsub.f32 %v2767_v18, %v772_v56 }
 0x24c   : > { %v762_v10 = vpop.permute.xlu0 %761 }
 0x24d   : > { %v859_v62 = vmul.f32 1.442695, %v841_v3  ;;  %v839_v11 = vsub.f32 %v2770_v19, %v762_v10 }
 0x24e   : > { %v777_v45 = vpop.permute.xlu1 %776 }
 0x24f   : > { %2461 = vpow2.f32 %v859_v62  ;;  %v855_v46 = vmul.f32 1.442695, %v839_v11  ;;  %v842_v42 = vsub.f32 %v2773_v20, %v777_v45 }
 0x251   : > { %2463 = vpow2.f32 %v855_v46  ;;  %v861_v43 = vmul.f32 1.442695, %v842_v42 }
 0x252   : > { %v767_v44 = vpop.permute.xlu1 %766 }
 0x253   : > { %v840_v54 = vsub.f32 %v2776_v21, %v767_v44  ;;  %2465 = vpow2.f32 %v861_v43 }
 0x255   : > { %v857_v55 = vmul.f32 1.442695, %v840_v54 }
 0x257   : > { %2467 = vpow2.f32 %v857_v55 }
 0x258   : > { %v792_v12 = vpop.permute.xlu1 %791 }
 0x259   : > { %v845_v18 = vsub.f32 %v2779_v22, %v792_v12 }
 0x25b   : > { %v867_v37 = vmul.f32 1.442695, %v845_v18 }
 0x25c   : > { %v2462_v60 = vpop.eup %2461  ;;  %v782_v61 = vpop.permute.xlu1 %781 }
 0x25d   : > { %2469 = vpow2.f32 %v867_v37  ;;  %v843_v19 = vsub.f32 %v2781_v23, %v782_v61  ;;  %963 = vadd.xlane.f32.xlu0 %v2462_v60 }
 0x25e   : > { %v2464_v13 = vpop.eup %2463 }
 0x25f   : > { %v863_v20 = vmul.f32 1.442695, %v843_v19  ;;  %959 = vadd.xlane.f32.xlu1 %v2464_v13 }
 0x260   : > { %v787_v59 = vpop.permute.xlu1 %786  ;;  %v2466_v5 = vpop.eup %2465 }
 0x261   : > { %2471 = vpow2.f32 %v863_v20  ;;  %v844_v21 = vsub.f32 %v2787_v26, %v787_v59  ;;  %v3132_v11 = vpack.c.bf16 %v2466_v5, %v2462_v60  ;;  %v3587_v59 = vld [vmem:[#allocation6_spill] sm:$0xff] }
 0x262   : > { %v807_v17 = vpop.permute.xlu0 %806 }
 0x263   : > { %v865_v14 = vmul.f32 1.442695, %v844_v21  ;;  %965 = vadd.xlane.f32.xlu1 %v2466_v5  ;;  %v848_v22 = vsub.f32 %v2799_v30, %v807_v17 }
 0x264   : > { %v2468_v56 = vpop.eup %2467  ;;  %v797_v3 = vpop.permute.xlu1 %796 }
 0x265   : > { %2473 = vpow2.f32 %v865_v14  ;;  %v846_v10 = vsub.f32 %v2784_v24, %v797_v3  ;;  %961 = vadd.xlane.f32.xlu0 %v2468_v56  ;;  %v3130_v23 = vpack.c.bf16 %v2468_v56, %v2464_v13  ;;  %v873_v26 = vmul.f32 1.442695, %v848_v22 }
 0x266   : > { %v817_v62 = vpop.permute.xlu0 %816 }
 0x267   : > { %v869_v45 = vmul.f32 1.442695, %v846_v10  ;;  %2299 = vmatprep.mubr.bf16.mxu1 %v3130_v23  ;;  %v850_v46 = vsub.f32 %v2796_v29, %v817_v62 }
 0x268   : > { %2300 = vmatmul.mubr.bf16.vlgmr.msra.gmra.mxu1 %v3132_v11  ;;  %v802_v42 = vpop.permute.xlu1 %801 }
 0x269   : > { %2475 = vpow2.f32 %v869_v45  ;;  %v847_v30 = vsub.f32 %v2793_v28, %v802_v42  ;;  %2316 = vmatpush3.bf16.msra.mxu1 %v3018_v53  ;;  %v877_v54 = vmul.f32 1.442695, %v850_v46 }
 0x26a   : > { %v2470_v24 = vpop.eup %2469  ;;  %v827_v43 = vpop.permute.xlu0 %826  ;;  %2317 = vmatprep.subr.bf16.mxu1 %v3031_v63  ;;  %2477 = vpow2.f32 %v873_v26  ;;  %v755_v26 = vmul.f32 1.442695, %v725_v40 }
 0x26b   : > { %v871_v44 = vmul.f32 1.442695, %v847_v30  ;;  %971 = vadd.xlane.f32.xlu0 %v2470_v24  ;;  %v852_v55 = vsub.f32 %v2812_v34, %v827_v43 }
 0x26c   : > { %v812_v12 = vpop.permute.xlu1 %811 }
 0x26d   : > { %2479 = vpow2.f32 %v871_v44  ;;  %v849_v29 = vsub.f32 %v2790_v27, %v812_v12  ;;  %2318 = vmatpush3.bf16.msra.mxu1 %v3031_v63  ;;  %v881_v37 = vmul.f32 1.442695, %v852_v55  ;;  %v927_v12 = vld [vmem:[#allocation3] sm:$0xff] }
 0x26e   : > { %v2472_v18 = vpop.eup %2471  ;;  %v837_v28 = vpop.permute.xlu0 %836  ;;  %2319 = vmatprep.subr.bf16.mxu1 %v3045_v9  ;;  %2481 = vpow2.f32 %v877_v54  ;;  %v929_v54 = vld [vmem:[#allocation3 + $0x10] sm:$0xff] }
 0x26f   : > { %v875_v53 = vmul.f32 1.442695, %v849_v29  ;;  %967 = vadd.xlane.f32.xlu0 %v2472_v18  ;;  %v854_v60 = vsub.f32 %v2808_v33, %v837_v28  ;;  %v945_v29 = vmul.f32 %v3071_v41, %v929_v54 }
 0x270   : > { %v822_v61 = vpop.permute.xlu1 %821 }
 0x271   : > { %2483 = vpow2.f32 %v875_v53  ;;  %v851_v34 = vsub.f32 %v2805_v32, %v822_v61  ;;  %2320 = vmatpush3.bf16.msra.mxu1 %v3045_v9  ;;  %v885_v63 = vmul.f32 1.442695, %v854_v60  ;;  %v943_v53 = vmul.f32 %v3036_v38, %v927_v12  ;;  %v930_v60 = vld [vmem:[#allocation3 + $0x18] sm:$0xff] }
 0x272   : > { %v2474_v19 = vpop.eup %2473  ;;  %2321 = vmatprep.subr.bf16.mxu1 %v3059_v50  ;;  %2485 = vpow2.f32 %v881_v37  ;;  %v3172_v4 = vpop.permute.xlu0 %1042 }
 0x273   : > { %v879_v27 = vmul.f32 1.442695, %v851_v34  ;;  %v905_v20 = vpack.c.bf16 %v2474_v19, %v2472_v18  ;;  %v928_v34 = vld [vmem:[#allocation3 + $0x8] sm:$0xff] }
 0x274   : > { %v832_v13 = vpop.permute.xlu1 %831 }
 0x275   : > { %2487 = vpow2.f32 %v879_v27  ;;  %v853_v21 = vsub.f32 %v3587_v59, %v832_v13  ;;  %2322 = vmatpush3.bf16.msra.mxu1 %v3059_v50  ;;  %2303 = vmatprep.mubr.bf16.mxu1 %v905_v20  ;;  %v944_v13 = vmul.f32 %v3057_v35, %v928_v34  ;;  %v933_v59 = vld [vmem:[#allocation3 + $0x30] sm:$0xff]  ;;  %v934_v35 = vld [vmem:[#allocation3 + $0x38] sm:$0xff] }
 0x276   : > { %v2476_v33 = vpop.eup %2475  ;;  %2323 = vmatprep.subr.bf16.mxu1 %v3073_v58  ;;  %2489 = vpow2.f32 %v885_v63  ;;  %v3176_v25 = vpop.permute.xlu0 %1057  ;;  %v949_v38 = vmul.f32 %v3095_v6, %v933_v59 }
 0x277   : > { %v883_v32 = vmul.f32 1.442695, %v853_v21  ;;  %973 = vadd.xlane.f32.xlu1 %v2476_v33  ;;  %v906_v9 = vpack.c.bf16 %v2476_v33, %v2470_v24  ;;  %v2478_v5 = vpop.eup %2477  ;;  %v931_v33 = vld [vmem:[#allocation3 + $0x20] sm:$0xff] }
 0x279   : > { %2491 = vpow2.f32 %v883_v32  ;;  %2304 = vmatmul.mubr.bf16.gmra.mxu1 %v906_v9 }
 0x27a   : > { %v2480_v17 = vpop.eup %2479  ;;  %2324 = vmatpush3.bf16.msra.mxu1 %v3073_v58  ;;  %2493 = vpow2.f32 %v755_v26  ;;  %v3180_v40 = vpop.permute.xlu0 %1077  ;;  %v936_v26 = vld [vmem:[#allocation3 + $0x48] sm:$0xff] }
 0x27b   : > { %969 = vadd.xlane.f32.xlu1 %v2474_v19  ;;  %v907_v14 = vpack.c.bf16 %v2478_v5, %v2480_v17  ;;  %2325 = vmatprep.subr.bf16.mxu1 %v3085_v48  ;;  %v2482_v56 = vpop.eup %2481  ;;  %v946_v19 = vmul.f32 %v3048_v47, %v930_v60  ;;  %v947_v47 = vmul.f32 %v3083_v2, %v931_v33  ;;  %v1027_v33 = vld [vmem:[#allocation4 + $0x18] sm:$0xff] }
 0x27c   : > { %v952_v12 = vmul.f32 %v3100_v16, %v936_v26 }
 0x27d   : > { %2307 = vmatprep.mubr.bf16.mxu1 %v907_v14 }
 0x27e   : > { %v2484_v50 = vpop.eup %2483  ;;  %2326 = vmatpush3.bf16.msra.mxu1 %v3085_v48 }
 0x27f   : > { %981 = vadd.xlane.f32.xlu1 %v2482_v56  ;;  %979 = vadd.xlane.f32.xlu0 %v2484_v50  ;;  %v908_v22 = vpack.c.bf16 %v2482_v56, %v2484_v50  ;;  %v2486_v3 = vpop.eup %2485  ;;  %v932_v56 = vld [vmem:[#allocation3 + $0x28] sm:$0xff] }
 0x280   : > { %2327 = vmatprep.subr.bf16.mxu1 %v3097_v1  ;;  %v948_v6 = vmul.f32 %v3076_v8, %v932_v56 }
 0x281   : > { %2308 = vmatmul.mubr.bf16.gmra.mxu1 %v908_v22 }
 0x282   : > { %v2488_v10 = vpop.eup %2487  ;;  %2328 = vmatpush3.bf16.msra.mxu1 %v3097_v1  ;;  %v757_v1 = vmul.f32 1.442695, %v726_v31  ;;  %v3174_v31 = vpop.permute.xlu1 %1047 }
 0x283   : > { %977 = vadd.xlane.f32.xlu1 %v2478_v5  ;;  %975 = vadd.xlane.f32.xlu0 %v2480_v17  ;;  %v909_v58 = vpack.c.bf16 %v2486_v3, %v2488_v10  ;;  %v2490_v62 = vpop.eup %2489  ;;  %v950_v17 = vmul.f32 %v3061_v36, %v934_v35  ;;  %v935_v36 = vld [vmem:[#allocation3 + $0x40] sm:$0xff] }
 0x284   : > { %2329 = vmatprep.subr.bf16.mxu1 %v3109_v49  ;;  %2495 = vpow2.f32 %v757_v1  ;;  %v951_v8 = vmul.f32 %v3115_v7, %v935_v36  ;;  %v940_v7 = vld [vmem:[#allocation3 + $0x68] sm:$0xff] }
 0x285   : > { %2311 = vmatprep.mubr.bf16.mxu1 %v909_v58 }
 0x286   : > { %v2492_v45 = vpop.eup %2491  ;;  %2330 = vmatpush3.bf16.msra.mxu1 %v3109_v49  ;;  %v3178_v52 = vpop.permute.xlu1 %1052 }
 0x287   : > { %989 = vadd.xlane.f32.xlu1 %v2490_v62  ;;  %987 = vadd.xlane.f32.xlu0 %v2492_v45  ;;  %v910_v48 = vpack.c.bf16 %v2490_v62, %v2492_v45  ;;  %v3166_v49 = vpop.eup %2493 }
 0x289   : > { %2312 = vmatmul.mubr.bf16.gmra.mxu1 %v910_v48 }
 0x28a   : > { %2331 = vmatprep.mubr.bf16.mxu1 %v3130_v23  ;;  %v3182_v23 = vpop.permute.xlu1 %1062 }
 0x28b   : > { %985 = vadd.xlane.f32.xlu1 %v2486_v3  ;;  %983 = vadd.xlane.f32.xlu0 %v2488_v10  ;;  %v937_v3 = vld [vmem:[#allocation3 + $0x50] sm:$0xff]  ;;  %v938_v10 = vld [vmem:[#allocation3 + $0x58] sm:$0xff] }
 0x28c   : > { %v953_v2 = vmul.f32 %v3107_v15, %v937_v3  ;;  %v954_v62 = vmul.f32 %v3088_v0, %v938_v10  ;;  %v942_v15 = vld [vmem:[#allocation3 + $0x78] sm:$0xff]  ;;  %v1028_v3 = vld [vmem:[#allocation4 + $0x50] sm:$0xff] }
 0x28e   : > { %v3186_v46 = vpop.permute.xlu1 %1072 }
 0x291   : > { %2332 = vmatmul.mubr.bf16.vlgmr.msra.gmra.mxu1 %v3132_v11  ;;  %v3169_v57 = vpop.eup %2495  ;;  %v3184_v11 = vpop.permute.xlu0 %1067 }
 0x292   : > { %2335 = vmatprep.mubr.bf16.mxu1 %v905_v20  ;;  %v3190_v30 = vpop.permute.xlu1 %1092  ;;  %v958_v60 = vmul.f32 %v3169_v57, %v942_v15 }
 0x295   : > { %v3188_v42 = vpop.permute.xlu0 %1097 }
 0x296   : > { %v3194_v43 = vpop.permute.xlu1 %1082 }
 0x299   : > { %2336 = vmatmul.mubr.bf16.gmra.mxu1 %v906_v9  ;;  %v3192_v24 = vpop.permute.xlu0 %1087 }
 0x29a   : > { %2339 = vmatprep.mubr.bf16.mxu1 %v907_v14  ;;  %v3198_v55 = vpop.permute.xlu1 %1102 }
 0x29c   : > { %1112 = vperm.xlu1 %2408, %v3166_v49  }
 0x29d   : > { %v3196_v44 = vpop.permute.xlu0 %1107 }
 0x2a1   : > { %1117 = vperm.xlu0 %2407, %v3169_v57   ;;  %2340 = vmatmul.mubr.bf16.gmra.mxu1 %v908_v22  ;;  %v1026_v57 = vld [vmem:[#allocation4 + $0x58] sm:$0xff] }
 0x2a2   : > { %2343 = vmatprep.mubr.bf16.mxu1 %v909_v58 }
 0x2a9   : > { %2344 = vmatmul.mubr.bf16.gmra.mxu1 %v910_v48 }
 0x2e6   : > { %v964_v18 = vpop.xlane.xlu0 %963 }
 0x2e7   : > { %v993_v28 = vadd.f32 %v964_v18, %v945_v29 }
 0x2e8   : > { %v960_v37 = vpop.xlane.xlu1 %959 }
 0x2e9   : > { %1010 = vst.msk [vmem:[#allocation3 + $0x10] sm:$0xff] %vm1007_vm1, %v993_v28  ;;  %v991_v61 = vadd.f32 %v960_v37, %v943_v53  ;;  %v941_v28 = vld [vmem:[#allocation3 + $0x70] sm:$0xff] }
 0x2ea   : > { %v957_v37 = vmul.f32 %v3166_v49, %v941_v28 }
 0x2eb   : > { %1008 = vst.msk [vmem:[#allocation3] sm:$0xff] %vm1007_vm1, %v991_v61 }
 0x2ec   : > { %v966_v27 = vpop.xlane.xlu1 %965 }
 0x2ed   : > { %v994_v63 = vadd.f32 %v966_v27, %v946_v19  ;;  %v939_v19 = vld [vmem:[#allocation3 + $0x60] sm:$0xff] }
 0x2ee   : > { %v962_v20 = vpop.xlane.xlu0 %961 }
 0x2ef   : > { %1011 = vst.msk [vmem:[#allocation3 + $0x18] sm:$0xff] %vm1007_vm1, %v994_v63  ;;  %v992_v41 = vadd.f32 %v962_v20, %v944_v13  ;;  %v955_v63 = vmul.f32 %v3118_v51, %v939_v19  ;;  %v956_v13 = vmul.f32 %v3112_v39, %v940_v7  ;;  %v1025_v51 = vld [vmem:[#allocation4] sm:$0xff]  ;;  %v1123_v39 = vmul.f32 %v3176_v25, %v1027_v33 }
 0x2f1   : > { %1009 = vst.msk [vmem:[#allocation3 + $0x8] sm:$0xff] %vm1007_vm1, %v992_v41 }
 0x2f4   : > { %v972_v21 = vpop.xlane.xlu0 %971 }
 0x2f5   : > { %v997_v32 = vadd.f32 %v972_v21, %v949_v38  ;;  %v1024_v38 = vld [vmem:[#allocation4 + $0x30] sm:$0xff]  ;;  %v1122_v21 = vmul.f32 %v3178_v52, %v1026_v57 }
 0x2f7   : > { %1014 = vst.msk [vmem:[#allocation3 + $0x30] sm:$0xff] %vm1007_vm1, %v997_v32 }
 0x2f8   : > { %v968_v9 = vpop.xlane.xlu0 %967 }
 0x2f9   : > { %v995_v5 = vadd.f32 %v968_v9, %v947_v47  ;;  %v1120_v47 = vmul.f32 %v3172_v4, %v1024_v38 }
 0x2fb   : > { %1012 = vst.msk [vmem:[#allocation3 + $0x20] sm:$0xff] %vm1007_vm1, %v995_v5 }
 0x300   : > { %v974_v14 = vpop.xlane.xlu1 %973 }
 0x301   : > { %v998_v50 = vadd.f32 %v974_v14, %v950_v17  ;;  %v1121_v14 = vmul.f32 %v3174_v31, %v1025_v51  ;;  %v1037_v51 = vld [vmem:[#allocation4 + $0x70] sm:$0xff] }
 0x303   : > { %1015 = vst.msk [vmem:[#allocation3 + $0x38] sm:$0xff] %vm1007_vm1, %v998_v50 }
 0x304   : > { %v970_v22 = vpop.xlane.xlu1 %969 }
 0x305   : > { %v996_v58 = vadd.f32 %v970_v22, %v948_v6  ;;  %v1030_v22 = vld [vmem:[#allocation4 + $0x8] sm:$0xff] }
 0x306   : > { %v1126_v10 = vmul.f32 %v3186_v46, %v1030_v22 }
 0x307   : > { %1013 = vst.msk [vmem:[#allocation3 + $0x28] sm:$0xff] %vm1007_vm1, %v996_v58  ;;  %v1031_v58 = vld [vmem:[#allocation4 + $0x48] sm:$0xff] }
 0x308   : > { %v980_v45 = vpop.xlane.xlu0 %979  ;;  %v982_v48 = vpop.xlane.xlu1 %981  ;;  %v1127_v26 = vmul.f32 %v3180_v40, %v1031_v58  ;;  %v1316_v58 = vld [vmem:[#allocation5 + $0x40] sm:$0xff] }
 0x309   : > { %v1001_v1 = vadd.f32 %v980_v45, %v953_v2  ;;  %v1002_v54 = vadd.f32 %v982_v48, %v954_v62  ;;  %v1124_v62 = vmul.f32 %v3182_v23, %v1028_v3  ;;  %v1029_v48 = vld [vmem:[#allocation4 + $0x68] sm:$0xff] }
 0x30b   : > { %1018 = vst.msk [vmem:[#allocation3 + $0x50] sm:$0xff] %vm1007_vm1, %v1001_v1  ;;  %1019 = vst.msk [vmem:[#allocation3 + $0x58] sm:$0xff] %vm1007_vm1, %v1002_v54  ;;  %v1034_v54 = vld [vmem:[#allocation4 + $0x10] sm:$0xff] }
 0x30c   : > { %v976_v29 = vpop.xlane.xlu0 %975  ;;  %v978_v18 = vpop.xlane.xlu1 %977  ;;  %v1130_v15 = vmul.f32 %v3190_v30, %v1034_v54  ;;  %v1319_v54 = vld [vmem:[#allocation5 + $0x70] sm:$0xff] }
 0x30d   : > { %v999_v53 = vadd.f32 %v976_v29, %v951_v8  ;;  %v1000_v0 = vadd.f32 %v978_v18, %v952_v12  ;;  %v1125_v12 = vmul.f32 %v3184_v11, %v1029_v48  ;;  %v1032_v18 = vld [vmem:[#allocation4 + $0x40] sm:$0xff]  ;;  %v1314_v48 = vld [vmem:[#allocation5 + $0x68] sm:$0xff] }
 0x30f   : > { %1016 = vst.msk [vmem:[#allocation3 + $0x40] sm:$0xff] %vm1007_vm1, %v999_v53  ;;  %1017 = vst.msk [vmem:[#allocation3 + $0x48] sm:$0xff] %vm1007_vm1, %v1000_v0  ;;  %v1035_v0 = vld [vmem:[#allocation4 + $0x38] sm:$0xff] }
 0x310   : > { %v988_v61 = vpop.xlane.xlu0 %987  ;;  %v990_v34 = vpop.xlane.xlu1 %989  ;;  %v1131_v7 = vmul.f32 %v3188_v42, %v1035_v0 }
 0x311   : > { %v1005_v27 = vadd.f32 %v988_v61, %v957_v37  ;;  %v1006_v16 = vadd.f32 %v990_v34, %v958_v60  ;;  %v1128_v60 = vmul.f32 %v3194_v43, %v1032_v18  ;;  %v1033_v34 = vld [vmem:[#allocation4 + $0x20] sm:$0xff] }
 0x313   : > { %1022 = vst.msk [vmem:[#allocation3 + $0x70] sm:$0xff] %vm1007_vm1, %v1005_v27  ;;  %1023 = vst.msk [vmem:[#allocation3 + $0x78] sm:$0xff] %vm1007_vm1, %v1006_v16  ;;  %v1038_v16 = vld [vmem:[#allocation4 + $0x78] sm:$0xff] }
 0x314   : > { %v984_v20 = vpop.xlane.xlu0 %983  ;;  %v986_v41 = vpop.xlane.xlu1 %985 }
 0x315   : > { %v1003_v59 = vadd.f32 %v984_v20, %v955_v63  ;;  %v1004_v49 = vadd.f32 %v986_v41, %v956_v13  ;;  %v1129_v20 = vmul.f32 %v3192_v24, %v1033_v34  ;;  %v1323_v34 = vld [vmem:[#allocation5 + $0x18] sm:$0xff] }
 0x317   : > { %1020 = vst.msk [vmem:[#allocation3 + $0x60] sm:$0xff] %vm1007_vm1, %v1003_v59  ;;  %1021 = vst.msk [vmem:[#allocation3 + $0x68] sm:$0xff] %vm1007_vm1, %v1004_v49  ;;  %v1036_v59 = vld [vmem:[#allocation4 + $0x60] sm:$0xff] }
 0x318   : > { %v3243_v63 = vpop.permute.xlu1 %1112 }
 0x319   : > { %v1134_v57 = vmul.f32 %v3243_v63, %v1038_v16 }
 0x31c   : > { %v3247_v33 = vpop.permute.xlu0 %1117 }
 0x328   : > { %v2301_v32 = vpop.f32.mrf.mxu1 }
 0x329   : > { %v1283_v9 = vadd.f32 %v2301_v32, %v1122_v21  ;;  %v1039_v21 = vld [vmem:[#allocation4 + $0x28] sm:$0xff] }
 0x32a   : > { %v1218_v5 = vpop.f32.mrf.mxu1 }
 0x32b   : > { %1299 = vst [vmem:[#allocation4 + $0x58] sm:$0xff] %v1283_v9  ;;  %v1281_v35 = vadd.f32 %v1218_v5, %v1120_v47  ;;  %v1132_v47 = vmul.f32 %v3198_v55, %v1036_v59 }
 0x32c   : > { %v2302_v17 = vpop.f32.mrf.mxu1 }
 0x32d   : > { %1297 = vst [vmem:[#allocation4 + $0x30] sm:$0xff] %v1281_v35  ;;  %v1284_v56 = vadd.f32 %v2302_v17, %v1123_v39  ;;  %v1135_v39 = vmul.f32 %v3247_v33, %v1039_v21  ;;  %v1315_v17 = vld [vmem:[#allocation5 + $0x10] sm:$0xff]  ;;  %v1327_v21 = vld [vmem:[#allocation5 + $0x60] sm:$0xff] }
 0x32e   : > { %v1221_v50 = vpop.f32.mrf.mxu1  ;;  %v1331_v3 = vmul.f32 %v1315_v17, %v3178_v52 }
 0x32f   : > { %1300 = vst [vmem:[#allocation4 + $0x18] sm:$0xff] %v1284_v56  ;;  %v1282_v6 = vadd.f32 %v1221_v50, %v1121_v14  ;;  %v1133_v56 = vmul.f32 %v3196_v44, %v1037_v51 }
 0x331   : > { %1298 = vst [vmem:[#allocation4] sm:$0xff] %v1282_v6  ;;  %v1313_v6 = vld [vmem:[#allocation5 + $0x28] sm:$0xff] }
 0x339   : > { %v2305_v2 = vpop.f32.mrf.mxu1 }
 0x33a   : > { %v1287_v45 = vadd.f32 %v2305_v2, %v1126_v10 }
 0x33b   : > { %v1234_v36 = vpop.f32.mrf.mxu1 }
 0x33c   : > { %1303 = vst [vmem:[#allocation4 + $0x8] sm:$0xff] %v1287_v45  ;;  %v1285_v1 = vadd.f32 %v1234_v36, %v1124_v62  ;;  %v1329_v62 = vmul.f32 %v1313_v6, %v3172_v4 }
 0x33d   : > { %v2306_v8 = vpop.f32.mrf.mxu1 }
 0x33e   : > { %1301 = vst [vmem:[#allocation4 + $0x50] sm:$0xff] %v1285_v1  ;;  %v1288_v29 = vadd.f32 %v2306_v8, %v1127_v26  ;;  %v1332_v26 = vmul.f32 %v1316_v58, %v3176_v25 }
 0x33f   : > { %v1237_v28 = vpop.f32.mrf.mxu1 }
 0x340   : > { %1304 = vst [vmem:[#allocation4 + $0x48] sm:$0xff] %v1288_v29  ;;  %v1286_v53 = vadd.f32 %v1237_v28, %v1125_v12  ;;  %v1330_v12 = vmul.f32 %v1314_v48, %v3174_v31  ;;  %v1317_v29 = vld [vmem:[#allocation5 + $0x48] sm:$0xff]  ;;  %v1335_v28 = vmul.f32 %v1319_v54, %v3186_v46 }
 0x341   : > { %v2309_v37 = vpop.f32.mrf.mxu1  ;;  %v1333_v0 = vmul.f32 %v1317_v29, %v3182_v23 }
 0x342   : > { %1302 = vst [vmem:[#allocation4 + $0x68] sm:$0xff] %v1286_v53  ;;  %v1291_v61 = vadd.f32 %v2309_v37, %v1130_v15  ;;  %v1320_v15 = vld [vmem:[#allocation5 + $0x38] sm:$0xff]  ;;  %v1318_v37 = vld [vmem:[#allocation5 + $0x30] sm:$0xff] }
 0x343   : > { %v1250_v19 = vpop.f32.mrf.mxu1 }
 0x344   : > { %1307 = vst [vmem:[#allocation4 + $0x10] sm:$0xff] %v1291_v61  ;;  %v1289_v27 = vadd.f32 %v1250_v19, %v1128_v60  ;;  %v1336_v61 = vmul.f32 %v1320_v15, %v3180_v40 }
 0x345   : > { %v2310_v13 = vpop.f32.mrf.mxu1 }
 0x346   : > { %1305 = vst [vmem:[#allocation4 + $0x40] sm:$0xff] %v1289_v27  ;;  %v1292_v41 = vadd.f32 %v2310_v13, %v1131_v7  ;;  %v1334_v7 = vmul.f32 %v1318_v37, %v3184_v11  ;;  %v1321_v27 = vld [vmem:[#allocation5 + $0x20] sm:$0xff]  ;;  %v1339_v13 = vmul.f32 %v1323_v34, %v3190_v30 }
 0x347   : > { %v1253_v49 = vpop.f32.mrf.mxu1  ;;  %v1337_v59 = vmul.f32 %v1321_v27, %v3194_v43 }
 0x348   : > { %1308 = vst [vmem:[#allocation4 + $0x38] sm:$0xff] %v1292_v41  ;;  %v1290_v38 = vadd.f32 %v1253_v49, %v1129_v20  ;;  %v1324_v20 = vld [vmem:[#allocation5 + $0x58] sm:$0xff] }
 0x349   : > { %v2313_v32 = vpop.f32.mrf.mxu1  ;;  %v1322_v49 = vld [vmem:[#allocation5 + $0x78] sm:$0xff] }
 0x34a   : > { %1306 = vst [vmem:[#allocation4 + $0x20] sm:$0xff] %v1290_v38  ;;  %v1295_v9 = vadd.f32 %v2313_v32, %v1134_v57  ;;  %v1340_v38 = vmul.f32 %v1324_v20, %v3188_v42 }
 0x34b   : > { %v1266_v5 = vpop.f32.mrf.mxu1 }
 0x34c   : > { %1311 = vst [vmem:[#allocation4 + $0x78] sm:$0xff] %v1295_v9  ;;  %v1293_v35 = vadd.f32 %v1266_v5, %v1132_v47  ;;  %v1338_v47 = vmul.f32 %v1322_v49, %v3192_v24  ;;  %v1325_v9 = vld [vmem:[#allocation5] sm:$0xff]  ;;  %v1343_v5 = vmul.f32 %v1327_v21, %v3243_v63 }
 0x34d   : > { %v2314_v14 = vpop.f32.mrf.mxu1  ;;  %v1341_v17 = vmul.f32 %v1325_v9, %v3198_v55 }
 0x34e   : > { %1309 = vst [vmem:[#allocation4 + $0x60] sm:$0xff] %v1293_v35  ;;  %v1296_v50 = vadd.f32 %v2314_v14, %v1135_v39  ;;  %v1328_v39 = vld [vmem:[#allocation5 + $0x50] sm:$0xff]  ;;  %v1326_v14 = vld [vmem:[#allocation5 + $0x8] sm:$0xff] }
 0x34f   : > { %v1269_v22 = vpop.f32.mrf.mxu1 }
 0x350   : > { %1312 = vst [vmem:[#allocation4 + $0x28] sm:$0xff] %v1296_v50  ;;  %v1294_v10 = vadd.f32 %v1269_v22, %v1133_v56  ;;  %v1344_v50 = vmul.f32 %v1328_v39, %v3247_v33  ;;  %v1342_v22 = vmul.f32 %v1326_v14, %v3196_v44 }
 0x351   : > { %v2333_v2 = vpop.f32.mrf.mxu1 }
 0x352   : > { %1310 = vst [vmem:[#allocation4 + $0x70] sm:$0xff] %v1294_v10  ;;  %v1492_v45 = vadd.f32 %v2333_v2, %v1331_v3 }
 0x353   : > { %v1427_v36 = vpop.f32.mrf.mxu1 }
 0x354   : > { %1508 = vst [vmem:[#allocation5 + $0x10] sm:$0xff] %v1492_v45  ;;  %v1490_v1 = vadd.f32 %v1427_v36, %v1329_v62 }
 0x355   : > { %v2334_v8 = vpop.f32.mrf.mxu1 }
 0x356   : > { %1506 = vst [vmem:[#allocation5 + $0x28] sm:$0xff] %v1490_v1  ;;  %v1493_v52 = vadd.f32 %v2334_v8, %v1332_v26 }
 0x357   : > { %v1430_v18 = vpop.f32.mrf.mxu1 }
 0x358   : > { %1509 = vst [vmem:[#allocation5 + $0x40] sm:$0xff] %v1493_v52  ;;  %v1491_v4 = vadd.f32 %v1430_v18, %v1330_v12 }
 0x359   : > { %v2337_v53 = vpop.f32.mrf.mxu1 }
 0x35a   : > { %1507 = vst [vmem:[#allocation5 + $0x68] sm:$0xff] %v1491_v4  ;;  %v1496_v25 = vadd.f32 %v2337_v53, %v1335_v28 }
 0x35b   : > { %v1443_v60 = vpop.f32.mrf.mxu1 }
 0x35c   : > { %1512 = vst [vmem:[#allocation5 + $0x70] sm:$0xff] %v1496_v25  ;;  %v1494_v31 = vadd.f32 %v1443_v60, %v1333_v0 }
 0x35d   : > { %v2338_v19 = vpop.f32.mrf.mxu1 }
 0x35e   : > { %1510 = vst [vmem:[#allocation5 + $0x48] sm:$0xff] %v1494_v31  ;;  %v1497_v46 = vadd.f32 %v2338_v19, %v1336_v61 }
 0x35f   : > { %v1446_v16 = vpop.f32.mrf.mxu1 }
 0x360   : > { %1513 = vst [vmem:[#allocation5 + $0x38] sm:$0xff] %v1497_v46  ;;  %v1495_v23 = vadd.f32 %v1446_v16, %v1334_v7 }
 0x361   : > { %v2341_v41 = vpop.f32.mrf.mxu1 }
 0x362   : > { %1511 = vst [vmem:[#allocation5 + $0x30] sm:$0xff] %v1495_v23  ;;  %v1500_v40 = vadd.f32 %v2341_v41, %v1339_v13 }
 0x363   : > { %v1459_v57 = vpop.f32.mrf.mxu1 }
 0x364   : > { %1516 = vst [vmem:[#allocation5 + $0x18] sm:$0xff] %v1500_v40  ;;  %v1498_v11 = vadd.f32 %v1459_v57, %v1337_v59 }
 0x365   : > { %v2342_v32 = vpop.f32.mrf.mxu1 }
 0x366   : > { %1514 = vst [vmem:[#allocation5 + $0x20] sm:$0xff] %v1498_v11  ;;  %v1501_v30 = vadd.f32 %v2342_v32, %v1340_v38 }
 0x367   : > { %v1462_v51 = vpop.f32.mrf.mxu1 }
 0x368   : > { %1517 = vst [vmem:[#allocation5 + $0x58] sm:$0xff] %v1501_v30  ;;  %v1499_v43 = vadd.f32 %v1462_v51, %v1338_v47 }
 0x369   : > { %v2345_v35 = vpop.f32.mrf.mxu1 }
 0x36a   : > { %1515 = vst [vmem:[#allocation5 + $0x78] sm:$0xff] %v1499_v43  ;;  %v1504_v42 = vadd.f32 %v2345_v35, %v1343_v5 }
 0x36b   : > { %v1475_v56 = vpop.f32.mrf.mxu1 }
 0x36c   : > { %1520 = vst [vmem:[#allocation5 + $0x60] sm:$0xff] %v1504_v42  ;;  %v1502_v24 = vadd.f32 %v1475_v56, %v1341_v17 }
 0x36d   : > { %v2346_v6 = vpop.f32.mrf.mxu1 }
 0x36e   : > { %1518 = vst [vmem:[#allocation5] sm:$0xff] %v1502_v24  ;;  %v1505_v3 = vadd.f32 %v2346_v6, %v1344_v50  ;;  %1541 = sbr.rel (%p2161_p10) target bundleno = 1096 (0x448), region = 44 }
 0x36f   : > { %v1478_v63 = vpop.f32.mrf.mxu1 }
 0x370   : > { %1521 = vst [vmem:[#allocation5 + $0x50] sm:$0xff] %v1505_v3  ;;  %v1503_v10 = vadd.f32 %v1478_v63, %v1342_v22 }
 0x372   : > { %1519 = vst [vmem:[#allocation5 + $0x8] sm:$0xff] %v1503_v10 }
 0x373   : > { %v1544_v55 = vld [vmem:[#allocation3 + $0x10] sm:$0xff]  ;;  %v1542_v58 = vld [vmem:[#allocation3] sm:$0xff]  ;;  %v1545_v2 = vld [vmem:[#allocation3 + $0x18] sm:$0xff]  ;;  %v2622_v62 = vmov 0  }
 0x374   : > { %2498 = vset.pattern.permute.xlu1 %v2622_v62  ;;  %2497 = vset.pattern.permute.xlu0 %v2622_v62  ;;  %2499 = vrcp.f32 %v1544_v55  ;;  %v1543_v33 = vld [vmem:[#allocation3 + $0x8] sm:$0xff]  ;;  %v1546_v45 = vld [vmem:[#allocation3 + $0x20] sm:$0xff]  ;;  %v1549_v48 = vld [vmem:[#allocation3 + $0x38] sm:$0xff] }
 0x375   : > { %2501 = vrcp.f32 %v1542_v58  ;;  %v1547_v44 = vld [vmem:[#allocation3 + $0x28] sm:$0xff]  ;;  %v1548_v36 = vld [vmem:[#allocation3 + $0x30] sm:$0xff]  ;;  %v1550_v1 = vld [vmem:[#allocation3 + $0x40] sm:$0xff] }
 0x376   : > { %2503 = vrcp.f32 %v1545_v2  ;;  %v1551_v26 = vld [vmem:[#allocation3 + $0x48] sm:$0xff]  ;;  %v1553_v52 = vld [vmem:[#allocation3 + $0x58] sm:$0xff]  ;;  %v1552_v18 = vld [vmem:[#allocation3 + $0x50] sm:$0xff] }
 0x377   : > { %2505 = vrcp.f32 %v1543_v33  ;;  %v1555_v4 = vld [vmem:[#allocation3 + $0x68] sm:$0xff]  ;;  %v1554_v53 = vld [vmem:[#allocation3 + $0x60] sm:$0xff]  ;;  %v1557_v25 = vld [vmem:[#allocation3 + $0x78] sm:$0xff] }
 0x378   : > { %2507 = vrcp.f32 %v1547_v44  ;;  %v1556_v60 = vld [vmem:[#allocation3 + $0x70] sm:$0xff]  ;;  %v1576_v13 = vld [vmem:[#allocation4 + $0x58] sm:$0xff]  ;;  %v1686_v40 = vld [vmem:[#allocation5 + $0x28] sm:$0xff] }
 0x379   : > { %2509 = vrcp.f32 %v1546_v45  ;;  %v1574_v23 = vld [vmem:[#allocation4 + $0x30] sm:$0xff]  ;;  %v1577_v38 = vld [vmem:[#allocation4 + $0x18] sm:$0xff]  ;;  %v1575_v32 = vld [vmem:[#allocation4] sm:$0xff] }
 0x37a   : > { %2511 = vrcp.f32 %v1549_v48  ;;  %v1688_v20 = vld [vmem:[#allocation5 + $0x10] sm:$0xff]  ;;  %v1689_v35 = vld [vmem:[#allocation5 + $0x40] sm:$0xff]  ;;  %v1687_v17 = vld [vmem:[#allocation5 + $0x68] sm:$0xff] }
 0x37b   : > { %2513 = vrcp.f32 %v1548_v36  ;;  %v3286_v50 = vld [vmem:[%s2701_s10 + $0x8] sm:$0xff]   ;;  %v3294_v63 = vld [vmem:[%s2701_s10] sm:$0xff]   ;;  %v1578_v58 = vld [vmem:[#allocation4 + $0x50] sm:$0xff] }
 0x37c   : > { %2515 = vrcp.f32 %v1551_v26  ;;  %v1579_v22 = vld [vmem:[#allocation4 + $0x68] sm:$0xff]  ;;  %v2170_v33 = vunpack.c.l.bf16 %v3286_v50  ;;  %v3299_v48 = vld [vmem:[%s2701_s10 + $0x10] sm:$0xff]  }
 0x37d   : > { %2517 = vrcp.f32 %v1550_v1  ;;  %v1581_v62 = vld [vmem:[#allocation4 + $0x48] sm:$0xff]  ;;  %v2166_v1 = vunpack.c.l.bf16 %v3294_v63 }
 0x37e   : > { %2519 = vrcp.f32 %v1553_v52  ;;  %v1580_v26 = vld [vmem:[#allocation4 + $0x8] sm:$0xff] }
 0x37f   : > { %2521 = vrcp.f32 %v1552_v18  ;;  %v1690_v52 = vld [vmem:[#allocation5 + $0x48] sm:$0xff]  ;;  %v3309_v18 = vld [vmem:[%s2701_s10 + $0x18] sm:$0xff]  }
 0x380   : > { %2523 = vrcp.f32 %v1555_v4 }
 0x381   : > { %v2500_v54 = vpop.eup %2499  ;;  %2525 = vrcp.f32 %v1554_v53 }
 0x382   : > { %v2502_v8 = vpop.eup %2501  ;;  %1602 = vperm.xlu1 %2498, %v2500_v54   ;;  %2527 = vrcp.f32 %v1557_v25  ;;  %v2171_v54 = vunpack.c.h.bf16 %v3286_v50 }
 0x383   : > { %v2504_v12 = vpop.eup %2503  ;;  %1592 = vperm.xlu0 %2497, %v2502_v8   ;;  %2529 = vrcp.f32 %v1556_v60  ;;  %v2167_v8 = vunpack.c.h.bf16 %v3294_v63 }
 0x384   : > { %v2506_v29 = vpop.eup %2505 }
 0x385   : > { %v2508_v28 = vpop.eup %2507 }
 0x386   : > { %1607 = vperm.xlu1 %2498, %v2504_v12   ;;  %v2510_v15 = vpop.eup %2509  ;;  %v1691_v12 = vld [vmem:[#allocation5 + $0x30] sm:$0xff] }
 0x387   : > { %1597 = vperm.xlu0 %2497, %v2506_v29   ;;  %v2512_v0 = vpop.eup %2511 }
 0x388   : > { %v2514_v37 = vpop.eup %2513 }
 0x389   : > { %v2516_v61 = vpop.eup %2515 }
 0x38a   : > { %1617 = vperm.xlu1 %2498, %v2508_v28   ;;  %v2518_v31 = vpop.eup %2517 }
 0x38b   : > { %1612 = vperm.xlu0 %2497, %v2510_v15   ;;  %v2520_v34 = vpop.eup %2519 }
 0x38c   : > { %v2522_v19 = vpop.eup %2521 }
 0x38d   : > { %v2524_v7 = vpop.eup %2523 }
 0x38e   : > { %1627 = vperm.xlu1 %2498, %v2512_v0   ;;  %v2526_v46 = vpop.eup %2525  ;;  %v1693_v0 = vld [vmem:[#allocation5 + $0x38] sm:$0xff] }
 0x38f   : > { %1622 = vperm.xlu0 %2497, %v2514_v37   ;;  %v2528_v27 = vpop.eup %2527  ;;  %v1692_v37 = vld [vmem:[#allocation5 + $0x70] sm:$0xff] }
 0x390   : > { %v2530_v16 = vpop.eup %2529 }
 0x392   : > { %1637 = vperm.xlu1 %2498, %v2516_v61   ;;  %v2175_v61 = vunpack.c.h.bf16 %v3299_v48 }
 0x393   : > { %1632 = vperm.xlu0 %2497, %v2518_v31   ;;  %v2174_v31 = vunpack.c.l.bf16 %v3299_v48 }
 0x396   : > { %1647 = vperm.xlu1 %2498, %v2520_v34  }
 0x397   : > { %1642 = vperm.xlu0 %2497, %v2522_v19  }
 0x39a   : > { %1657 = vperm.xlu1 %2498, %v2524_v7  }
 0x39b   : > { %1652 = vperm.xlu0 %2497, %v2526_v46  }
 0x39e   : > { %1667 = vperm.xlu1 %2498, %v2528_v27   ;;  %v2179_v27 = vunpack.c.h.bf16 %v3309_v18 }
 0x39f   : > { %1662 = vperm.xlu0 %2497, %v2530_v16   ;;  %v1583_v16 = vld [vmem:[#allocation4 + $0x20] sm:$0xff] }
 0x3fd   : > { %v1603_v41 = vpop.permute.xlu1 %1602 }
 0x3fe   : > { %v3269_v59 = vmul.f32 %v1603_v41, %v1576_v13  ;;  %v1593_v49 = vpop.permute.xlu0 %1592  ;;  %v1704_v11 = vmul.f32 %v1688_v20, %v1603_v41  ;;  %v3328_v13 = vld [vmem:[%s2701_s10 + $0x20] sm:$0xff]   ;;  %v2178_v41 = vunpack.c.l.bf16 %v3309_v18 }
 0x3ff   : > { %v3271_v57 = vmul.f32 %v1593_v49, %v1574_v23  ;;  %v1702_v47 = vmul.f32 %v1686_v40, %v1593_v49  ;;  %v1582_v23 = vld [vmem:[#allocation4 + $0x40] sm:$0xff] }
 0x400   : > { %v1720_v21 = vmul.f32 %v3269_v59, %v3269_v59 }
 0x401   : > { %v1718_v30 = vmul.f32 %v3271_v57, %v3271_v57  ;;  %v1608_v9 = vpop.permute.xlu1 %1607 }
 0x402   : > { %v1736_v51 = vsub.f32 %v1704_v11, %v1720_v21  ;;  %v3277_v5 = vmul.f32 %v1608_v9, %v1577_v38  ;;  %v1598_v43 = vpop.permute.xlu0 %1597  ;;  %v1705_v10 = vmul.f32 %v1689_v35, %v1608_v9 }
 0x403   : > { %v1734_v39 = vsub.f32 %v1702_v47, %v1718_v30  ;;  %v3279_v42 = vmul.f32 %v1598_v43, %v1575_v32  ;;  %v1703_v55 = vmul.f32 %v1687_v17, %v1598_v43  ;;  %v2183_v30 = vunpack.c.h.bf16 %v3328_v13 }
 0x404   : > { %v3281_v14 = vmax.f32 %v1736_v51, 0.0  ;;  %v1721_v56 = vmul.f32 %v3277_v5, %v3277_v5  ;;  %v2182_v51 = vunpack.c.l.bf16 %v3328_v13 }
 0x405   : > { %v3288_v24 = vmax.f32 %v1734_v39, 0.0  ;;  %v1719_v6 = vmul.f32 %v3279_v42, %v3279_v42  ;;  %v1618_v3 = vpop.permute.xlu1 %1617 }
 0x406   : > { %2531 = vrsqrt.f32 %v3281_v14  ;;  %v1613_v2 = vpop.permute.xlu0 %1612  ;;  %v1737_v44 = vsub.f32 %v1705_v10, %v1721_v56  ;;  %v3301_v36 = vmul.f32 %v1618_v3, %v1579_v22  ;;  %v1707_v7 = vmul.f32 %v1691_v12, %v1618_v3  ;;  %v1694_v22 = vld [vmem:[#allocation5 + $0x20] sm:$0xff] }
 0x407   : > { %2533 = vrsqrt.f32 %v3288_v24  ;;  %v1735_v45 = vsub.f32 %v1703_v55, %v1719_v6  ;;  %v3306_v29 = vmul.f32 %v1613_v2, %v1578_v58  ;;  %v1706_v46 = vmul.f32 %v1690_v52, %v1613_v2  ;;  %v1695_v6 = vld [vmem:[#allocation5 + $0x78] sm:$0xff] }
 0x408   : > { %v3311_v4 = vmax.f32 %v1737_v44, 0.0  ;;  %v1723_v53 = vmul.f32 %v3301_v36, %v3301_v36  ;;  %vm1782_vm2 = vcmp.eq.f32.partialorder %v3281_v14, inf  ;;  %vm1784_vm3 = vcmp.eq.f32.partialorder %v3281_v14, 0.0 }
 0x409   : > { %v1628_v28 = vpop.permute.xlu1 %1627  ;;  %v3313_v15 = vmax.f32 %v1735_v45, 0.0  ;;  %v1722_v34 = vmul.f32 %v3306_v29, %v3306_v29  ;;  %v1785_v55 = vand.u32 2147483648, %v3281_v14  ;;  %vm1768_vm4 = vcmp.eq.f32.partialorder %v3288_v24, inf  ;;  %v1585_v45 = vld [vmem:[#allocation4 + $0x38] sm:$0xff] }
 0x40a   : > { %v3317_v25 = vmul.f32 %v1628_v28, %v1581_v62  ;;  %v1623_v60 = vpop.permute.xlu0 %1622  ;;  %2535 = vrsqrt.f32 %v3311_v4  ;;  %v1709_v20 = vmul.f32 %v1693_v0, %v1628_v28  ;;  %v1739_v38 = vsub.f32 %v1707_v7, %v1723_v53 }
 0x40b   : > { %v3323_v19 = vmul.f32 %v1623_v60, %v1580_v26  ;;  %2537 = vrsqrt.f32 %v3313_v15  ;;  %v1708_v40 = vmul.f32 %v1692_v37, %v1623_v60  ;;  %v1738_v11 = vsub.f32 %v1706_v46, %v1722_v34 }
 0x40c   : > { %v1725_v21 = vmul.f32 %v3317_v25, %v3317_v25  ;;  %v3342_v39 = vmax.f32 %v1739_v38, 0.0  ;;  %vm1770_vm5 = vcmp.eq.f32.partialorder %v3288_v24, 0.0  ;;  %v1771_v2 = vand.u32 2147483648, %v3288_v24 }
 0x40d   : > { %v1638_v49 = vpop.permute.xlu1 %1637  ;;  %v1724_v32 = vmul.f32 %v3323_v19, %v3323_v19  ;;  %v3344_v35 = vmax.f32 %v1738_v11, 0.0  ;;  %vm1789_vm6 = vcmp.eq.f32.partialorder %v3311_v4, inf  ;;  %vm1791_vm7 = vcmp.eq.f32.partialorder %v3311_v4, 0.0 }
 0x40e   : > { %v1633_v47 = vpop.permute.xlu0 %1632  ;;  %v3337_v9 = vmul.f32 %v1638_v49, %v1583_v16  ;;  %v1741_v17 = vsub.f32 %v1709_v20, %v1725_v21  ;;  %2539 = vrsqrt.f32 %v3342_v39  ;;  %v1711_v62 = vmul.f32 %v1695_v6, %v1638_v49 }
 0x40f   : > { %v3340_v43 = vmul.f32 %v1633_v47, %v1582_v23  ;;  %v1740_v56 = vsub.f32 %v1708_v40, %v1724_v32  ;;  %2541 = vrsqrt.f32 %v3344_v35  ;;  %v1710_v44 = vmul.f32 %v1694_v22, %v1633_v47 }
 0x410   : > { %v1727_v3 = vmul.f32 %v3337_v9, %v3337_v9  ;;  %v3360_v28 = vmax.f32 %v1741_v17, 0.0  ;;  %v1792_v7 = vand.u32 2147483648, %v3311_v4  ;;  %vm1775_vm8 = vcmp.eq.f32.partialorder %v3313_v15, inf }
 0x411   : > { %v1726_v10 = vmul.f32 %v3340_v43, %v3340_v43  ;;  %v1648_v26 = vpop.permute.xlu1 %1647  ;;  %v3362_v53 = vmax.f32 %v1740_v56, 0.0  ;;  %vm1777_vm9 = vcmp.eq.f32.partialorder %v3313_v15, 0.0  ;;  %v1778_v49 = vand.u32 2147483648, %v3313_v15 }
 0x412   : > { %v1743_v37 = vsub.f32 %v1711_v62, %v1727_v3  ;;  %2543 = vrsqrt.f32 %v3360_v28  ;;  %v3371_v46 = vmul.f32 %v1648_v26, %v1585_v45  ;;  %v1643_v38 = vpop.permute.xlu0 %1642  ;;  %vm1803_vm10 = vcmp.eq.f32.partialorder %v3342_v39, inf }
 0x413   : > { %v2532_v58 = vpop.eup %2531  ;;  %v1742_v60 = vsub.f32 %v1710_v44, %v1726_v10  ;;  %2545 = vrsqrt.f32 %v3362_v53  ;;  %v1806_v32 = vand.u32 2147483648, %v3342_v39  ;;  %vm1805_vm11 = vcmp.eq.f32.partialorder %v3342_v39, 0.0 }
 0x414   : > { %v2534_v12 = vpop.eup %2533  ;;  %v1781_v52 = vmul.f32 %v2532_v58, %v3281_v14  ;;  %v3390_v47 = vmax.f32 %v1743_v37, 0.0  ;;  %vm1796_vm12 = vcmp.eq.f32.partialorder %v3344_v35, inf  ;;  %vm1798_vm13 = vcmp.eq.f32.partialorder %v3344_v35, 0.0  ;;  %v1696_v58 = vld [vmem:[#allocation5 + $0x18] sm:$0xff] }
 0x415   : > { %v1767_v0 = vmul.f32 %v2534_v12, %v3288_v24  ;;  %v1658_v62 = vpop.permute.xlu1 %1657  ;;  %v1799_v45 = vand.u32 2147483648, %v3344_v35  ;;  %vm1817_vm14 = vcmp.eq.f32.partialorder %v3360_v28, inf  ;;  %vm1819_vm15 = vcmp.eq.f32.partialorder %v3360_v28, 0.0 }
 0x416   : > { %v1783_v34 = vsel %vm1782_vm2, %v3281_v14, %v1781_v52  ;;  %v1584_v14 = vld [vmem:[#allocation4 + $0x10] sm:$0xff]  ;;  %2547 = vrsqrt.f32 %v3390_v47  ;;  %v1820_v52 = vand.u32 2147483648, %v3360_v28  ;;  %vm1810_vm0 = vcmp.eq.f32.partialorder %v3362_v53, inf }
 0x417   : > { %v1786_v16 = vsel %vm1784_vm3, %v1785_v55, %v1783_v34  ;;  %v1769_v23 = vsel %vm1768_vm4, %v3288_v24, %v1767_v0  ;;  %v2536_v11 = vpop.eup %2535  ;;  %v1697_v24 = vld [vmem:[#allocation5 + $0x58] sm:$0xff]  ;;  %v3403_v10 = vmul.f32 %v1643_v38, %v1584_v14  ;;  %vm1812_vm1 = vcmp.eq.f32.partialorder %v3362_v53, 0.0 }
 0x418   : > { %v1912_v20 = vmul.f32 %v2170_v33, %v1786_v16  ;;  %v1772_v40 = vsel %vm1770_vm5, %v1771_v2, %v1769_v23  ;;  %v3392_v33 = vmax.f32 %v1742_v60, 0.0  ;;  %v2538_v17 = vpop.eup %2537  ;;  %v1788_v6 = vmul.f32 %v2536_v11, %v3311_v4  ;;  %v1587_v2 = vld [vmem:[#allocation4 + $0x70] sm:$0xff] }
 0x419   : > { %v1910_v21 = vmul.f32 %v2166_v1, %v1772_v40  ;;  %v1729_v1 = vmul.f32 %v3371_v46, %v3371_v46  ;;  %v1774_v3 = vmul.f32 %v2538_v17, %v3313_v15  ;;  %v1713_v55 = vmul.f32 %v1697_v24, %v1648_v26  ;;  %v1653_v24 = vpop.permute.xlu0 %1652 }
 0x41a   : > { %v1928_v56 = vadd.f32 %v1912_v20, %v3269_v59  ;;  %v1790_v59 = vsel %vm1789_vm6, %v3311_v4, %v1788_v6  ;;  %2549 = vrsqrt.f32 %v3392_v33  ;;  %v1712_v60 = vmul.f32 %v1696_v58, %v1643_v38 }
 0x41b   : > { %v1926_v22 = vadd.f32 %v1910_v21, %v3271_v57  ;;  %v1793_v57 = vsel %vm1791_vm7, %v1792_v7, %v1790_v59  ;;  %v1776_v44 = vsel %vm1775_vm8, %v3313_v15, %v1774_v3  ;;  %v1745_v4 = vsub.f32 %v1713_v55, %v1729_v1  ;;  %v2540_v0 = vpop.eup %2539  ;;  %v1699_v7 = vld [vmem:[#allocation5 + $0x8] sm:$0xff]  ;;  %v1586_v3 = vld [vmem:[#allocation4 + $0x60] sm:$0xff] }
 0x41c   : > { %1944 = vst [vmem:[%s2706_s13 + $0x10] sm:$0xff] %v1928_v56  ;;  %v1913_v12 = vmul.f32 %v2171_v54, %v1793_v57  ;;  %v1779_v26 = vsel %vm1777_vm9, %v1778_v49, %v1776_v44  ;;  %v1728_v34 = vmul.f32 %v3403_v10, %v3403_v10  ;;  %v3429_v50 = vmul.f32 %v1658_v62, %v1587_v2  ;;  %v2542_v54 = vpop.eup %2541  ;;  %v1668_v44 = vpop.permute.xlu1 %1667 }
 0x41d   : > { %1942 = vst [vmem:[%s2706_s13] sm:$0xff] %v1926_v22  ;;  %v1911_v37 = vmul.f32 %v2167_v8, %v1779_v26  ;;  %v1802_v16 = vmul.f32 %v2540_v0, %v3342_v39  ;;  %v3434_v23 = vmax.f32 %v1745_v4, 0.0  ;;  %v1795_v8 = vmul.f32 %v2542_v54, %v3344_v35  ;;  %v1700_v54 = vld [vmem:[#allocation5 + $0x60] sm:$0xff] }
 0x41e   : > { %v1929_v15 = vadd.f32 %v1913_v12, %v3277_v5  ;;  %v1744_v20 = vsub.f32 %v1712_v60, %v1728_v34  ;;  %v1731_v40 = vmul.f32 %v3429_v50, %v3429_v50  ;;  %v1715_v5 = vmul.f32 %v1699_v7, %v1658_v62 }
 0x41f   : > { %v1927_v63 = vadd.f32 %v1911_v37, %v3279_v42  ;;  %v1804_v49 = vsel %vm1803_vm10, %v3342_v39, %v1802_v16  ;;  %2551 = vrsqrt.f32 %v3434_v23  ;;  %v2544_v14 = vpop.eup %2543  ;;  %v1797_v38 = vsel %vm1796_vm12, %v3344_v35, %v1795_v8 }
 0x420   : > { %1945 = vst [vmem:[%s2706_s13 + $0x18] sm:$0xff] %v1929_v15  ;;  %v1807_v42 = vsel %vm1805_vm11, %v1806_v32, %v1804_v49  ;;  %v1813_v11 = vand.u32 2147483648, %v3362_v53  ;;  %v3453_v21 = vmax.f32 %v1744_v20, 0.0  ;;  %v2546_v17 = vpop.eup %2545  ;;  %v1800_v6 = vsel %vm1798_vm13, %v1799_v45, %v1797_v38  ;;  %v2200_v20 = vld [vmem:[%s2701_s10 + $0x28] sm:$0xff]  }
 0x421   : > { %1943 = vst [vmem:[%s2706_s13 + $0x8] sm:$0xff] %v1927_v63  ;;  %v1915_v56 = vmul.f32 %v2175_v61, %v1807_v42  ;;  %v1816_v1 = vmul.f32 %v2544_v14, %v3360_v28  ;;  %v1747_v39 = vsub.f32 %v1715_v5, %v1731_v40  ;;  %v1914_v32 = vmul.f32 %v2174_v31, %v1800_v6 }
 0x422   : > { %v1809_v22 = vmul.f32 %v2546_v17, %v3362_v53  ;;  %vm1831_vm2 = vcmp.eq.f32.partialorder %v3390_v47, inf  ;;  %2553 = vrsqrt.f32 %v3453_v21  ;;  %vm1833_vm3 = vcmp.eq.f32.partialorder %v3390_v47, 0.0 }
 0x423   : > { %v1931_v59 = vadd.f32 %v1915_v56, %v3301_v36  ;;  %v1818_v61 = vsel %vm1817_vm14, %v3360_v28, %v1816_v1  ;;  %v1834_v48 = vand.u32 2147483648, %v3390_v47  ;;  %v1930_v31 = vadd.f32 %v1914_v32, %v3306_v29  ;;  %v1698_v36 = vld [vmem:[#allocation5] sm:$0xff]  ;;  %v2548_v2 = vpop.eup %2547  ;;  %v1589_v28 = vld [vmem:[#allocation4 + $0x28] sm:$0xff] }
 0x424   : > { %v1821_v35 = vsel %vm1819_vm15, %v1820_v52, %v1818_v61  ;;  %v1811_v55 = vsel %vm1810_vm0, %v3362_v53, %v1809_v22  ;;  %v3477_v58 = vmax.f32 %v1747_v39, 0.0  ;;  %vm1824_vm4 = vcmp.eq.f32.partialorder %v3392_v33, inf  ;;  %v1588_v53 = vld [vmem:[#allocation4 + $0x78] sm:$0xff]  ;;  %v1663_v52 = vpop.permute.xlu0 %1662 }
 0x425   : > { %1947 = vst [vmem:[%s2706_s13 + $0x28] sm:$0xff] %v1931_v59  ;;  %v1917_v62 = vmul.f32 %v2179_v27, %v1821_v35  ;;  %v1814_v57 = vsel %vm1812_vm1, %v1813_v11, %v1811_v55  ;;  %v3485_v29 = vmul.f32 %v1653_v24, %v1586_v3  ;;  %1946 = vst [vmem:[%s2706_s13 + $0x20] sm:$0xff] %v1930_v31  ;;  %vm1826_vm5 = vcmp.eq.f32.partialorder %v3392_v33, 0.0  ;;  %v1701_v27 = vld [vmem:[#allocation5 + $0x50] sm:$0xff] }
 0x426   : > { %v1916_v12 = vmul.f32 %v2178_v41, %v1814_v57  ;;  %v1830_v26 = vmul.f32 %v2548_v2, %v3390_v47  ;;  %2555 = vrsqrt.f32 %v3477_v58  ;;  %v1827_v37 = vand.u32 2147483648, %v3392_v33  ;;  %v2201_v59 = vld [vmem:[%s2701_s10 + $0x30] sm:$0xff]  }
 0x427   : > { %v2550_v45 = vpop.eup %2549  ;;  %v1933_v4 = vadd.f32 %v1917_v62, %v3317_v25  ;;  %v1714_v18 = vmul.f32 %v1698_v36, %v1653_v24  ;;  %v1730_v34 = vmul.f32 %v3485_v29, %v3485_v29  ;;  %v3502_v7 = vmul.f32 %v1668_v44, %v1589_v28 }
 0x428   : > { %v1823_v0 = vmul.f32 %v2550_v45, %v3392_v33  ;;  %v1932_v41 = vadd.f32 %v1916_v12, %v3323_v19  ;;  %v1832_v60 = vsel %vm1831_vm2, %v3390_v47, %v1830_v26  ;;  %v1717_v16 = vmul.f32 %v1701_v27, %v1668_v44  ;;  %v2202_v26 = vld [vmem:[%s2701_s10 + $0x38] sm:$0xff]  }
 0x429   : > { %1949 = vst [vmem:[%s2706_s13 + $0x38] sm:$0xff] %v1933_v4  ;;  %v1835_v25 = vsel %vm1833_vm3, %v1834_v48, %v1832_v60  ;;  %v3510_v19 = vmul.f32 %v1663_v52, %v1588_v53  ;;  %v1746_v40 = vsub.f32 %v1714_v18, %v1730_v34  ;;  %v1733_v47 = vmul.f32 %v3502_v7, %v3502_v7 }
 0x42a   : > { %v1825_v15 = vsel %vm1824_vm4, %v3392_v33, %v1823_v0  ;;  %1948 = vst [vmem:[%s2706_s13 + $0x30] sm:$0xff] %v1932_v41  ;;  %v1919_v63 = vmul.f32 %v2183_v30, %v1835_v25  ;;  %v1716_v5 = vmul.f32 %v1700_v54, %v1663_v52  ;;  %v2187_v24 = vunpack.c.h.bf16 %v2200_v20 }
 0x42b   : > { %v1828_v8 = vsel %vm1826_vm5, %v1827_v37, %v1825_v15  ;;  %v1732_v14 = vmul.f32 %v3510_v19, %v3510_v19  ;;  %v1762_v38 = vmax.f32 %v1746_v40, 0.0  ;;  %v1749_v33 = vsub.f32 %v1717_v16, %v1733_v47 }
 0x42c   : > { %v1918_v49 = vmul.f32 %v2182_v51, %v1828_v8  ;;  %v2552_v42 = vpop.eup %2551  ;;  %v1935_v30 = vadd.f32 %v1919_v63, %v3337_v9  ;;  %vm1845_vm6 = vcmp.eq.f32.partialorder %v3434_v23, inf  ;;  %v1848_v13 = vand.u32 2147483648, %v3434_v23 }
 0x42d   : > { %v1844_v17 = vmul.f32 %v2552_v42, %v3434_v23  ;;  %v1748_v56 = vsub.f32 %v1716_v5, %v1732_v14  ;;  %2557 = vrsqrt.f32 %v1762_v38  ;;  %vm1847_vm7 = vcmp.eq.f32.partialorder %v3434_v23, 0.0 }
 0x42e   : > { %v1934_v11 = vadd.f32 %v1918_v49, %v3340_v43  ;;  %1951 = vst [vmem:[%s2706_s13 + $0x48] sm:$0xff] %v1935_v30  ;;  %v1765_v9 = vmax.f32 %v1749_v33, 0.0  ;;  %v2186_v39 = vunpack.c.l.bf16 %v2200_v20  ;;  %vm1838_vm8 = vcmp.eq.f32.partialorder %v3453_v21, inf }
 0x42f   : > { %v2554_v51 = vpop.eup %2553  ;;  %v1846_v6 = vsel %vm1845_vm6, %v3434_v23, %v1844_v17  ;;  %v1764_v1 = vmax.f32 %v1748_v56, 0.0  ;;  %v1841_v3 = vand.u32 2147483648, %v3453_v21  ;;  %vm1840_vm9 = vcmp.eq.f32.partialorder %v3453_v21, 0.0 }
 0x430   : > { %1950 = vst [vmem:[%s2706_s13 + $0x40] sm:$0xff] %v1934_v11  ;;  %v1849_v43 = vsel %vm1847_vm7, %v1848_v13, %v1846_v6  ;;  %v1837_v32 = vmul.f32 %v2554_v51, %v3453_v21  ;;  %2559 = vrsqrt.f32 %v1765_v9  ;;  %v2191_v55 = vunpack.c.h.bf16 %v2201_v59 }
 0x431   : > { %v1921_v22 = vmul.f32 %v2187_v24, %v1849_v43  ;;  %2561 = vrsqrt.f32 %v1764_v1  ;;  %vm1859_vm10 = vcmp.eq.f32.partialorder %v3477_v58, inf  ;;  %v1862_v2 = vand.u32 2147483648, %v3477_v58 }
 0x432   : > { %v1839_v61 = vsel %vm1838_vm8, %v3453_v21, %v1837_v32  ;;  %vm1861_vm11 = vcmp.eq.f32.partialorder %v3477_v58, 0.0  ;;  %v2190_v45 = vunpack.c.l.bf16 %v2201_v59  ;;  %vm1852_vm12 = vcmp.eq.f32.partialorder %v1762_v38, inf }
 0x433   : > { %v2556_v23 = vpop.eup %2555  ;;  %v1937_v48 = vadd.f32 %v1921_v22, %v3371_v46  ;;  %v1842_v31 = vsel %vm1840_vm9, %v1841_v3, %v1839_v61  ;;  %v1855_v27 = vand.u32 2147483648, %v1762_v38  ;;  %vm1854_vm13 = vcmp.eq.f32.partialorder %v1762_v38, 0.0 }
 0x434   : > { %v1920_v35 = vmul.f32 %v2186_v39, %v1842_v31  ;;  %v1858_v36 = vmul.f32 %v2556_v23, %v3477_v58  ;;  %v2195_v0 = vunpack.c.h.bf16 %v2202_v26  ;;  %vm1873_vm14 = vcmp.eq.f32.partialorder %v1765_v9, inf }
 0x435   : > { %1953 = vst [vmem:[%s2706_s13 + $0x58] sm:$0xff] %v1937_v48  ;;  %v1876_v41 = vand.u32 2147483648, %v1765_v9  ;;  %vm1875_vm15 = vcmp.eq.f32.partialorder %v1765_v9, 0.0  ;;  %vm1866_vm0 = vcmp.eq.f32.partialorder %v1764_v1, inf  ;;  %v1869_v34 = vand.u32 2147483648, %v1764_v1 }
 0x436   : > { %v1936_v62 = vadd.f32 %v1920_v35, %v3403_v10  ;;  %v1860_v21 = vsel %vm1859_vm10, %v3477_v58, %v1858_v36  ;;  %v2194_v58 = vunpack.c.l.bf16 %v2202_v26  ;;  %vm1868_vm1 = vcmp.eq.f32.partialorder %v1764_v1, 0.0 }
 0x437   : > { %v1863_v57 = vsel %vm1861_vm11, %v1862_v2, %v1860_v21 }
 0x438   : > { %1952 = vst [vmem:[%s2706_s13 + $0x50] sm:$0xff] %v1936_v62  ;;  %v1923_v46 = vmul.f32 %v2191_v55, %v1863_v57 }
 0x43a   : > { %v1939_v28 = vadd.f32 %v1923_v46, %v3429_v50  ;;  %v2558_v44 = vpop.eup %2557 }
 0x43b   : > { %v1851_v12 = vmul.f32 %v2558_v44, %v1762_v38 }
 0x43c   : > { %1955 = vst [vmem:[%s2706_s13 + $0x68] sm:$0xff] %v1939_v28 }
 0x43d   : > { %v2560_v53 = vpop.eup %2559  ;;  %v1853_v52 = vsel %vm1852_vm12, %v1762_v38, %v1851_v12 }
 0x43e   : > { %v2562_v10 = vpop.eup %2561  ;;  %v1856_v4 = vsel %vm1854_vm13, %v1855_v27, %v1853_v52  ;;  %v1872_v37 = vmul.f32 %v2560_v53, %v1765_v9 }
 0x43f   : > { %v1922_v18 = vmul.f32 %v2190_v45, %v1856_v4  ;;  %v1865_v50 = vmul.f32 %v2562_v10, %v1764_v1 }
 0x440   : > { %v1874_v60 = vsel %vm1873_vm14, %v1765_v9, %v1872_v37 }
 0x441   : > { %v1938_v54 = vadd.f32 %v1922_v18, %v3485_v29  ;;  %v1877_v25 = vsel %vm1875_vm15, %v1876_v41, %v1874_v60  ;;  %v1867_v15 = vsel %vm1866_vm0, %v1764_v1, %v1865_v50 }
 0x442   : > { %v1925_v16 = vmul.f32 %v2195_v0, %v1877_v25  ;;  %v1870_v63 = vsel %vm1868_vm1, %v1869_v34, %v1867_v15 }
 0x443   : > { %1954 = vst [vmem:[%s2706_s13 + $0x60] sm:$0xff] %v1938_v54  ;;  %v1924_v8 = vmul.f32 %v2194_v58, %v1870_v63 }
 0x444   : > { %v1941_v20 = vadd.f32 %v1925_v16, %v3502_v7 }
 0x445   : > { %v1940_v40 = vadd.f32 %v1924_v8, %v3510_v19 }
 0x446   : > { %1957 = vst [vmem:[%s2706_s13 + $0x78] sm:$0xff] %v1941_v20 }
 0x447   : > { %1956 = vst [vmem:[%s2706_s13 + $0x70] sm:$0xff] %v1940_v40 }
 0x448 PF: > { %s14_s21 = sadd.s32 1, %s2617_s21   ;;  %s3588_s15 = smov %s2605_s18 }
 0x449   : > { %p11_p11 = scmp.ge.s32.totalorder %s14_s21, 10   ;;  %s3589_s16 = smov %s2609_s19 }
 0x44a   : > { %s3590_s17 = smov %s2613_s20  ;;  %s3591_s18 = smov %s3595_s22 }
 0x44b   : > { %s3592_s19 = smov %s3599_s23  ;;  %s3593_s20 = smov %s3603_s24 }
 0x44c   :  { %13 = sbr.rel (!%p11_p11) target bundleno = 4 (0x4), region = 83 }

</bundles_post_ra>
